<compile_context>
chip_gen: v5e
topology: v5e:2x2
jax: 0.10.0
libtpu: 0.0.40
codegen_flags: <defaults>
</compile_context>

<pallas_src>
import functools
import math

import jax
import jax.numpy as jnp
from jax import lax
from jax.experimental import pallas as pl
from jax.experimental.pallas import tpu as pltpu

# eval-mode BatchNorm1d with default running stats reduces to a per-channel scale
_BN_SCALE = 1.0 / math.sqrt(1.0 + 1e-5)
_NEG_INF = -1e30


# ----------------------------------------------------------------------------- #
# Grid-shape heuristics
# ----------------------------------------------------------------------------- #
def _pick_graphs_per_step(num_graphs, n_nodes):
    """Graphs per grid step: as fat as possible while keeping >=2 grid steps
    (so the 'parallel' axis still splits across the 2 TensorCores on v7x)."""
    # TODO(synk): gate on pltpu.get_tpu_info(); single-TC chips (v5e/v6e) prefer one
    # fat step to avoid the ~0.35us per-step overhead instead of >=2 parallel steps.
    for gb in (8, 4, 2, 1):
        if (gb <= num_graphs and num_graphs % gb == 0 and num_graphs // gb >= 2
                and (gb * n_nodes) % 8 == 0):
            return gb
    return num_graphs


# ----------------------------------------------------------------------------- #
# Fused attention + aggregation (+ optional pose-encoder MLP) kernel
# ----------------------------------------------------------------------------- #
def _attn_agg_kernel(*refs, num_heads, n_nodes, gb, self_attn, feat_dim,
                     pose_relu_flags):
    """For `gb` graphs in one grid step, equivalent (per graph) to:

        x   = x_in (+ poses_mlp(poses) when fused)
        msg = MultiheadAttention(x, kv, kv, key_padding_mask)     # kv = x if self-attn
        out = x + agg_mlp(concat([x, msg], -1))
    """
    f = feat_dim
    idx = 0
    xq_ref = refs[idx]; idx += 1
    if self_attn:
        xkv_ref = xq_ref
    else:
        xkv_ref = refs[idx]; idx += 1
    mbias_ref = refs[idx]; idx += 1

    x = xq_ref[...]                                    # [gb*N, F] f32 (residual path)

    if pose_relu_flags is not None:                    # fused pose-encoder MLP
        h = refs[idx][...]; idx += 1                   # padded poses [gb*N, Kpad] f32
        for relu in pose_relu_flags:
            w_ref, b_ref = refs[idx], refs[idx + 1]; idx += 2
            h = jnp.dot(h.astype(jnp.bfloat16), w_ref[...],
                        preferred_element_type=jnp.float32) + b_ref[...]
            if relu:
                h = jnp.maximum(h, 0.0)
        x = x + h                                      # encoded feature

    wqkvo_ref = refs[idx]                              # [F, 4F] = [Wq|Wk|Wv|Wo] bf16
    bias_ref = refs[idx + 1]                           # [1, 7F] = [bq|bk|bv|bo|b1|b2]
    w12_ref = refs[idx + 2]                            # [2F, 3F] = [W1|W2] bf16
    o_ref = refs[idx + 3]

    xb = x.astype(jnp.bfloat16)
    mbias = mbias_ref[...]                             # [gb, 1, N] additive key bias

    # ---- projections (1/sqrt(D) folded into Wq/bq); single bf16 cast afterwards ----
    if self_attn:
        qkv = jnp.dot(xb, wqkvo_ref[:, :3 * f],
                      preferred_element_type=jnp.float32) + bias_ref[:, :3 * f]
        qkv_b = qkv.astype(jnp.bfloat16)
        q_b, k_b, v_b = qkv_b[:, :f], qkv_b[:, f:2 * f], qkv_b[:, 2 * f:]
    else:
        yb = xkv_ref[...].astype(jnp.bfloat16)
        q = jnp.dot(xb, wqkvo_ref[:, :f],
                    preferred_element_type=jnp.float32) + bias_ref[:, :f]
        kv = jnp.dot(yb, wqkvo_ref[:, f:3 * f],
                     preferred_element_type=jnp.float32) + bias_ref[:, f:3 * f]
        q_b = q.astype(jnp.bfloat16)
        kv_b = kv.astype(jnp.bfloat16)
        k_b, v_b = kv_b[:, :f], kv_b[:, f:]

    # ---- per-graph / per-head attention (unrolled; shapes tiny and static) ----
    d = f // num_heads
    ctx_rows = []
    for g in range(gb):
        r0 = g * n_nodes
        qg = q_b[r0:r0 + n_nodes, :]
        kg = k_b[r0:r0 + n_nodes, :]
        vg = v_b[r0:r0 + n_nodes, :]
        mb = mbias[g]                                  # [1, N]
        heads = []
        for hh in range(num_heads):
            lo = hh * d
            # scores = qh @ kh^T via dot_general contracting last dims (no transpose)
            s = lax.dot_general(qg[:, lo:lo + d], kg[:, lo:lo + d],
                                (((1,), (1,)), ((), ())),
                                preferred_element_type=jnp.float32)    # [N, N] f32
            s = s + mb
            s = s - jnp.max(s, axis=-1, keepdims=True)
            p = jnp.exp(s)
            denom = jnp.maximum(jnp.sum(p, axis=-1, keepdims=True), 1e-30)
            p = p * pl.reciprocal(denom, approx=True)
            heads.append(jnp.dot(p.astype(jnp.bfloat16), vg[:, lo:lo + d],
                                 preferred_element_type=jnp.float32))  # [N, D]
        ctx_rows.append(heads[0] if num_heads == 1
                        else jnp.concatenate(heads, axis=-1))          # [N, F]
    ctx = ctx_rows[0] if gb == 1 else jnp.concatenate(ctx_rows, axis=0)  # [gb*N, F]

    # ---- single Wo matmul on the lane-packed context ----
    msg = jnp.dot(ctx.astype(jnp.bfloat16), wqkvo_ref[:, 3 * f:],
                  preferred_element_type=jnp.float32) + bias_ref[:, 3 * f:4 * f]

    # ---- aggregation MLP on lane-concat [x || msg] (K = 2F), then residual ----
    cat = jnp.concatenate([xb, msg.astype(jnp.bfloat16)], axis=-1)     # [gb*N, 2F]
    h1 = jnp.dot(cat, w12_ref[:, :2 * f],
                 preferred_element_type=jnp.float32) + bias_ref[:, 4 * f:6 * f]
    h1 = jnp.maximum(h1, 0.0)
    out = jnp.dot(h1.astype(jnp.bfloat16), w12_ref[:, 2 * f:],
                  preferred_element_type=jnp.float32) + bias_ref[:, 6 * f:]
    o_ref[...] = (x + out).astype(o_ref.dtype)


def pallas_attn_agg(x_q, x_kv, mbias, layer_w, *, num_heads, n_nodes,
                    pose=None, pose_layers=None):
    """x_q: [G*N, F]; x_kv: [G*N, F] or None (self-attention); mbias: [G, 1, N]."""
    M, F = x_q.shape
    G = M // n_nodes
    gb = _pick_graphs_per_step(G, n_nodes)
    rows = gb * n_nodes
    self_attn = x_kv is None

    def full(shape):
        return pl.BlockSpec(shape, lambda b: (0,) * len(shape))

    in_specs = [pl.BlockSpec((rows, F), lambda b: (b, 0))]
    args = [x_q]
    if not self_attn:
        in_specs.append(pl.BlockSpec((rows, F), lambda b: (b, 0)))
        args.append(x_kv)
    in_specs.append(pl.BlockSpec((gb, 1, n_nodes), lambda b: (b, 0, 0)))
    args.append(mbias)

    pose_relu_flags = None
    if pose is not None:
        in_specs.append(pl.BlockSpec((rows, pose.shape[1]), lambda b: (b, 0)))
        args.append(pose)
        n_pl = len(pose_layers)
        pose_relu_flags = tuple(i < n_pl - 1 for i in range(n_pl))   # hidden -> ReLU
        for (w, b) in pose_layers:
            in_specs += [full(w.shape), full(b.shape)]
            args += [w, b]

    for name in ("wqkvo", "bias", "w12"):
        in_specs.append(full(layer_w[name].shape))
        args.append(layer_w[name])

    kernel = functools.partial(
        _attn_agg_kernel, num_heads=num_heads, n_nodes=n_nodes, gb=gb,
        self_attn=self_attn, feat_dim=F, pose_relu_flags=pose_relu_flags)

    return pl.pallas_call(
        kernel,
        out_shape=jax.ShapeDtypeStruct((M, F), x_q.dtype),
        grid=(G // gb,),
        in_specs=in_specs,
        out_specs=pl.BlockSpec((rows, F), lambda b: (b, 0)),
        compiler_params=pltpu.CompilerParams(dimension_semantics=("parallel",)),
    )(*args)


# ----------------------------------------------------------------------------- #
# Parameter init (deterministic, synthetic) + kernel-ready packing
# ----------------------------------------------------------------------------- #
def _init_linear(key, din, dout):
    kw, kb = jax.random.split(key)
    w = jax.random.normal(kw, (din, dout), jnp.float32) / math.sqrt(din)
    b = jax.random.normal(kb, (1, dout), jnp.float32) * 0.01
    return w, b


def _init_mlp(key, dims):
    layers = []
    n = len(dims) - 1
    for i in range(n):
        key, sub = jax.random.split(key)
        w, b = _init_linear(sub, dims[i], dims[i + 1])
        layers.append((w, b, i < n - 1))        # hidden layers: Linear -> BN -> ReLU
    return layers


def _init_attn(key, e):
    p = {}
    for name in ("q", "k", "v", "o"):
        key, sub = jax.random.split(key)
        w, b = _init_linear(sub, e, e)
        p["w" + name], p["b" + name] = w, b
    return p


def init_params(key, pose_dim, feature_dim, keypoint_enc_hidden_dim, num_layers):
    params = {}
    key, sub = jax.random.split(key)
    params["poses_mlp"] = _init_mlp(sub, [pose_dim] + keypoint_enc_hidden_dim + [feature_dim])
    params["attn"], params["agg_mlp"] = [], []
    for _ in range(num_layers):
        for _ in range(2):                      # self-attention block, cross-attention block
            key, ka, km = jax.random.split(key, 3)
            params["attn"].append(_init_attn(ka, feature_dim))
            params["agg_mlp"].append(_init_mlp(km, [2 * feature_dim, 2 * feature_dim, feature_dim]))
    return params


def prepare_params(raw, *, num_heads, feature_dim, pose_dim):
    """Fold BN + attention scales, pad pose K to a multiple of 8, pack weights."""
    F = feature_dim
    prep = {"layers": []}

    kpad = max(8, ((pose_dim + 7) // 8) * 8)
    pose_layers = []
    for i, (w, b, hidden) in enumerate(raw["poses_mlp"]):
        if i == 0 and w.shape[0] != kpad:
            w = jnp.pad(w, ((0, kpad - w.shape[0]), (0, 0)))   # zero rows: no-op
        scale = _BN_SCALE if hidden else 1.0
        pose_layers.append(((w * scale).astype(jnp.bfloat16),
                            (b * scale).astype(jnp.float32)))
    prep["poses_mlp"] = pose_layers

    qscale = 1.0 / math.sqrt(F // num_heads)
    for ap, mp in zip(raw["attn"], raw["agg_mlp"]):
        (w1, b1, _), (w2, b2, _) = mp
        wqkvo = jnp.concatenate(
            [ap["wq"] * qscale, ap["wk"], ap["wv"], ap["wo"]], axis=1).astype(jnp.bfloat16)
        w12 = jnp.concatenate([w1 * _BN_SCALE, w2], axis=1).astype(jnp.bfloat16)
        bias = jnp.concatenate(
            [ap["bq"] * qscale, ap["bk"], ap["bv"], ap["bo"],
             b1 * _BN_SCALE, b2], axis=1).astype(jnp.float32)
        prep["layers"].append({"wqkvo": wqkvo, "bias": bias, "w12": w12})
    return prep


# ----------------------------------------------------------------------------- #
# Forward pass
# ----------------------------------------------------------------------------- #
def attentional_graph_forward(params, features, poses, masks, *,
                              include_pose=True, num_heads=2, num_layers=1):
    B, two, N, F = features.shape
    assert two == 2 and num_layers >= 1
    G = 2 * B

    # graph-major layout: graph index g = iteration * B + b, a graph's rows contiguous
    feats = jnp.transpose(features.astype(jnp.float32), (1, 0, 2, 3)).reshape(G * N, F)
    # key-padding mask -> additive bias, hoisted out of all layer loops
    mbias = jnp.where(jnp.transpose(masks, (1, 0, 2)), _NEG_INF, 0.0
                      ).astype(jnp.float32).reshape(G, 1, N)

    pose2d = None
    if include_pose:
        P = poses.shape[-1]
        kpad = params["poses_mlp"][0][0].shape[0]        # static (padded) pose K
        pose2d = jnp.transpose(poses.astype(jnp.float32), (1, 0, 2, 3)).reshape(G * N, P)
        pose2d = jnp.pad(pose2d, ((0, 0), (0, kpad - P)))

    half = B * N
    for layer in range(num_layers):
        lw_self = params["layers"][2 * layer]
        lw_cross = params["layers"][2 * layer + 1]

        # self-attention blocks: both graphs are independent -> one batched call;
        # the pose-encoder MLP is fused into the very first call.
        if layer == 0 and include_pose:
            feats = pallas_attn_agg(feats, None, mbias, lw_self,
                                    num_heads=num_heads, n_nodes=N,
                                    pose=pose2d, pose_layers=params["poses_mlp"])
        else:
            feats = pallas_attn_agg(feats, None, mbias, lw_self,
                                    num_heads=num_heads, n_nodes=N)

        # cross-attention blocks: the reference updates features[:, 0] in place before
        # iteration 1 reads it, so the two directions must stay sequential.
        f0, f1 = feats[:half], feats[half:]
        m0, m1 = mbias[:B], mbias[B:]
        new0 = pallas_attn_agg(f0, f1, m1, lw_cross, num_heads=num_heads, n_nodes=N)
        new1 = pallas_attn_agg(f1, new0, m0, lw_cross, num_heads=num_heads, n_nodes=N)
        feats = jnp.concatenate([new0, new1], axis=0)

    return feats.reshape(2, B, N, F).transpose(1, 0, 2, 3)


# ----------------------------------------------------------------------------- #
if __name__ == "__main__":
    B, N = 2, 8                 # batch, nodes per graph
    POSE_DIM = 3
    FEATURE_DIM = 32
    KP_ENC_HIDDEN = [32]
    NUM_HEADS = 2
    NUM_LAYERS = 1
    INCLUDE_POSE = True

    key = jax.random.PRNGKey(0)
    kf, kp, kparams = jax.random.split(key, 3)

    features = jax.random.normal(kf, (B, 2, N, FEATURE_DIM), jnp.float32)
    poses = jax.random.normal(kp, (B, 2, N, POSE_DIM), jnp.float32)
    # last node of every graph is padding (True = ignore as key)
    masks = jnp.zeros((B, 2, N), dtype=bool).at[:, :, -1].set(True)

    raw_params = init_params(kparams, POSE_DIM, FEATURE_DIM, KP_ENC_HIDDEN, NUM_LAYERS)
    params = prepare_params(raw_params, num_heads=NUM_HEADS,
                            feature_dim=FEATURE_DIM, pose_dim=POSE_DIM)

    fwd = jax.jit(functools.partial(
        attentional_graph_forward, include_pose=INCLUDE_POSE,
        num_heads=NUM_HEADS, num_layers=NUM_LAYERS))
    out = jax.block_until_ready(fwd(params, features, poses, masks))

    assert out.shape == (B, 2, N, FEATURE_DIM), out.shape
    assert bool(jnp.all(jnp.isfinite(out)))
    print("KERNEL_OK")
</pallas_src>

<mosaic_0001>
module attributes {stable_mosaic.version = 11 : i64} {
  func.func @_attn_agg_kernel(%arg0: i32, %arg1: memref<16x32xf32, #tpu.memory_space<vmem>>, %arg2: memref<2x1x8xf32, #tpu.memory_space<vmem>>, %arg3: memref<16x8xf32, #tpu.memory_space<vmem>>, %arg4: memref<8x32xbf16, #tpu.memory_space<vmem>>, %arg5: memref<1x32xf32, #tpu.memory_space<vmem>>, %arg6: memref<32x32xbf16, #tpu.memory_space<vmem>>, %arg7: memref<1x32xf32, #tpu.memory_space<vmem>>, %arg8: memref<32x128xbf16, #tpu.memory_space<vmem>>, %arg9: memref<1x224xf32, #tpu.memory_space<vmem>>, %arg10: memref<64x96xbf16, #tpu.memory_space<vmem>>, %arg11: memref<16x32xf32, #tpu.memory_space<vmem>>) attributes {dimension_semantics = [#tpu.dimension_semantics<parallel>], iteration_bounds = array<i64: 2>, scalar_prefetch = 0 : i64, scratch_operands = 0 : i64, tpu.core_type = #tpu.core_type<tc>, window_params = [{transform_indices = @transform_0, window_bounds = array<i64: 16, 32>}, {transform_indices = @transform_1, window_bounds = array<i64: 2, 1, 8>}, {transform_indices = @transform_2, window_bounds = array<i64: 16, 8>}, {pipeline_mode = #tpu.pipeline_mode<synchronous>, transform_indices = @transform_3, window_bounds = array<i64: 8, 32>}, {pipeline_mode = #tpu.pipeline_mode<synchronous>, transform_indices = @transform_4, window_bounds = array<i64: 1, 32>}, {pipeline_mode = #tpu.pipeline_mode<synchronous>, transform_indices = @transform_5, window_bounds = array<i64: 32, 32>}, {pipeline_mode = #tpu.pipeline_mode<synchronous>, transform_indices = @transform_6, window_bounds = array<i64: 1, 32>}, {pipeline_mode = #tpu.pipeline_mode<synchronous>, transform_indices = @transform_7, window_bounds = array<i64: 32, 128>}, {pipeline_mode = #tpu.pipeline_mode<synchronous>, transform_indices = @transform_8, window_bounds = array<i64: 1, 224>}, {pipeline_mode = #tpu.pipeline_mode<synchronous>, transform_indices = @transform_9, window_bounds = array<i64: 64, 96>}, {transform_indices = @transform_10, window_bounds = array<i64: 16, 32>}]} {
    %c0 = arith.constant 0 : index
    %c0_0 = arith.constant 0 : index
    %0 = vector.load %arg1[%c0, %c0_0] : memref<16x32xf32, #tpu.memory_space<vmem>>, vector<16x32xf32>
    %c0_1 = arith.constant 0 : index
    %c0_2 = arith.constant 0 : index
    %1 = vector.load %arg3[%c0_1, %c0_2] : memref<16x8xf32, #tpu.memory_space<vmem>>, vector<16x8xf32>
    %2 = arith.truncf %1 : vector<16x8xf32> to vector<16x8xbf16>
    %c0_3 = arith.constant 0 : index
    %c0_4 = arith.constant 0 : index
    %3 = vector.load %arg4[%c0_3, %c0_4] : memref<8x32xbf16, #tpu.memory_space<vmem>>, vector<8x32xbf16>
    %cst = arith.constant dense<0.000000e+00> : vector<16x32xf32>
    %4 = tpu.matmul %2, %3, %cst {dimension_numbers = #tpu.dot_dimension_numbers<[1], [0], [0], [1], [0, 0, 1, 1], [], []>} : vector<16x8xbf16>, vector<8x32xbf16>, vector<16x32xf32> -> vector<16x32xf32>
    %c0_5 = arith.constant 0 : index
    %c0_6 = arith.constant 0 : index
    %5 = vector.load %arg5[%c0_5, %c0_6] : memref<1x32xf32, #tpu.memory_space<vmem>>, vector<1x32xf32>
    %6 = vector.broadcast %5 : vector<1x32xf32> to vector<16x32xf32>
    %7 = arith.addf %4, %6 : vector<16x32xf32>
    %cst_7 = arith.constant 0.000000e+00 : f32
    %8 = vector.broadcast %cst_7 : f32 to vector<16x32xf32>
    %9 = arith.maximumf %7, %8 : vector<16x32xf32>
    %10 = arith.truncf %9 : vector<16x32xf32> to vector<16x32xbf16>
    %c0_8 = arith.constant 0 : index
    %c0_9 = arith.constant 0 : index
    %11 = vector.load %arg6[%c0_8, %c0_9] : memref<32x32xbf16, #tpu.memory_space<vmem>>, vector<32x32xbf16>
    %cst_10 = arith.constant dense<0.000000e+00> : vector<16x32xf32>
    %12 = tpu.matmul %10, %11, %cst_10 {dimension_numbers = #tpu.dot_dimension_numbers<[1], [0], [0], [1], [0, 0, 1, 1], [], []>} : vector<16x32xbf16>, vector<32x32xbf16>, vector<16x32xf32> -> vector<16x32xf32>
    %c0_11 = arith.constant 0 : index
    %c0_12 = arith.constant 0 : index
    %13 = vector.load %arg7[%c0_11, %c0_12] : memref<1x32xf32, #tpu.memory_space<vmem>>, vector<1x32xf32>
    %14 = vector.broadcast %13 : vector<1x32xf32> to vector<16x32xf32>
    %15 = arith.addf %12, %14 : vector<16x32xf32>
    %16 = arith.addf %0, %15 : vector<16x32xf32>
    %17 = arith.truncf %16 : vector<16x32xf32> to vector<16x32xbf16>
    %c0_13 = arith.constant 0 : index
    %c0_14 = arith.constant 0 : index
    %c0_15 = arith.constant 0 : index
    %18 = vector.load %arg2[%c0_13, %c0_14, %c0_15] : memref<2x1x8xf32, #tpu.memory_space<vmem>>, vector<2x1x8xf32>
    %c0_16 = arith.constant 0 : index
    %c0_17 = arith.constant 0 : index
    %19 = vector.load %arg8[%c0_16, %c0_17] : memref<32x128xbf16, #tpu.memory_space<vmem>>, vector<32x96xbf16>
    %cst_18 = arith.constant dense<0.000000e+00> : vector<16x96xf32>
    %20 = tpu.matmul %17, %19, %cst_18 {dimension_numbers = #tpu.dot_dimension_numbers<[1], [0], [0], [1], [0, 0, 1, 1], [], []>} : vector<16x32xbf16>, vector<32x96xbf16>, vector<16x96xf32> -> vector<16x96xf32>
    %c0_19 = arith.constant 0 : index
    %c0_20 = arith.constant 0 : index
    %21 = vector.load %arg9[%c0_19, %c0_20] : memref<1x224xf32, #tpu.memory_space<vmem>>, vector<1x96xf32>
    %22 = vector.broadcast %21 : vector<1x96xf32> to vector<16x96xf32>
    %23 = arith.addf %20, %22 : vector<16x96xf32>
    %24 = arith.truncf %23 : vector<16x96xf32> to vector<16x96xbf16>
    %25 = vector.extract_strided_slice %24 {offsets = [0, 0], sizes = [16, 32], strides = [1, 1]} : vector<16x96xbf16> to vector<16x32xbf16>
    %26 = vector.extract_strided_slice %24 {offsets = [0, 32], sizes = [16, 32], strides = [1, 1]} : vector<16x96xbf16> to vector<16x32xbf16>
    %27 = vector.extract_strided_slice %24 {offsets = [0, 64], sizes = [16, 32], strides = [1, 1]} : vector<16x96xbf16> to vector<16x32xbf16>
    %28 = vector.extract_strided_slice %25 {offsets = [0, 0], sizes = [8, 32], strides = [1, 1]} : vector<16x32xbf16> to vector<8x32xbf16>
    %29 = vector.extract_strided_slice %26 {offsets = [0, 0], sizes = [8, 32], strides = [1, 1]} : vector<16x32xbf16> to vector<8x32xbf16>
    %30 = vector.extract_strided_slice %27 {offsets = [0, 0], sizes = [8, 32], strides = [1, 1]} : vector<16x32xbf16> to vector<8x32xbf16>
    %31 = vector.extract_strided_slice %18 {offsets = [0, 0, 0], sizes = [1, 1, 8], strides = [1, 1, 1]} : vector<2x1x8xf32> to vector<1x1x8xf32>
    %32 = vector.shape_cast %31 : vector<1x1x8xf32> to vector<1x8xf32>
    %33 = vector.extract_strided_slice %28 {offsets = [0, 0], sizes = [8, 16], strides = [1, 1]} : vector<8x32xbf16> to vector<8x16xbf16>
    %34 = vector.extract_strided_slice %29 {offsets = [0, 0], sizes = [8, 16], strides = [1, 1]} : vector<8x32xbf16> to vector<8x16xbf16>
    %cst_21 = arith.constant dense<0.000000e+00> : vector<8x8xf32>
    %35 = tpu.matmul %33, %34, %cst_21 {dimension_numbers = #tpu.dot_dimension_numbers<[1], [1], [0], [0], [0, 0, 1, 0], [], []>} : vector<8x16xbf16>, vector<8x16xbf16>, vector<8x8xf32> -> vector<8x8xf32>
    %36 = vector.broadcast %32 : vector<1x8xf32> to vector<8x8xf32>
    %37 = arith.addf %35, %36 : vector<8x8xf32>
    %cst_22 = arith.constant dense<0xFF800000> : vector<8xf32>
    %38 = vector.multi_reduction <maximumf>, %37, %cst_22 [1] : vector<8x8xf32> to vector<8xf32>
    %39 = vector.shape_cast %38 : vector<8xf32> to vector<8x1xf32>
    %40 = vector.broadcast %39 : vector<8x1xf32> to vector<8x8xf32>
    %41 = arith.subf %37, %40 : vector<8x8xf32>
    %42 = math.exp %41 : vector<8x8xf32>
    %cst_23 = arith.constant dense<0.000000e+00> : vector<8xf32>
    %43 = vector.multi_reduction <add>, %42, %cst_23 [1] : vector<8x8xf32> to vector<8xf32>
    %44 = vector.shape_cast %43 : vector<8xf32> to vector<8x1xf32>
    %cst_24 = arith.constant 1.000000e-30 : f32
    %45 = vector.broadcast %cst_24 : f32 to vector<8x1xf32>
    %46 = arith.maximumf %44, %45 : vector<8x1xf32>
    %47 = tpu.reciprocal %46 {approx = true} : vector<8x1xf32> -> vector<8x1xf32>
    %48 = vector.broadcast %47 : vector<8x1xf32> to vector<8x8xf32>
    %49 = arith.mulf %42, %48 : vector<8x8xf32>
    %50 = arith.truncf %49 : vector<8x8xf32> to vector<8x8xbf16>
    %51 = vector.extract_strided_slice %30 {offsets = [0, 0], sizes = [8, 16], strides = [1, 1]} : vector<8x32xbf16> to vector<8x16xbf16>
    %cst_25 = arith.constant dense<0.000000e+00> : vector<8x16xf32>
    %52 = tpu.matmul %50, %51, %cst_25 {dimension_numbers = #tpu.dot_dimension_numbers<[1], [0], [0], [1], [0, 0, 1, 1], [], []>} : vector<8x8xbf16>, vector<8x16xbf16>, vector<8x16xf32> -> vector<8x16xf32>
    %53 = vector.extract_strided_slice %28 {offsets = [0, 16], sizes = [8, 16], strides = [1, 1]} : vector<8x32xbf16> to vector<8x16xbf16>
    %54 = vector.extract_strided_slice %29 {offsets = [0, 16], sizes = [8, 16], strides = [1, 1]} : vector<8x32xbf16> to vector<8x16xbf16>
    %cst_26 = arith.constant dense<0.000000e+00> : vector<8x8xf32>
    %55 = tpu.matmul %53, %54, %cst_26 {dimension_numbers = #tpu.dot_dimension_numbers<[1], [1], [0], [0], [0, 0, 1, 0], [], []>} : vector<8x16xbf16>, vector<8x16xbf16>, vector<8x8xf32> -> vector<8x8xf32>
    %56 = vector.broadcast %32 : vector<1x8xf32> to vector<8x8xf32>
    %57 = arith.addf %55, %56 : vector<8x8xf32>
    %cst_27 = arith.constant dense<0xFF800000> : vector<8xf32>
    %58 = vector.multi_reduction <maximumf>, %57, %cst_27 [1] : vector<8x8xf32> to vector<8xf32>
    %59 = vector.shape_cast %58 : vector<8xf32> to vector<8x1xf32>
    %60 = vector.broadcast %59 : vector<8x1xf32> to vector<8x8xf32>
    %61 = arith.subf %57, %60 : vector<8x8xf32>
    %62 = math.exp %61 : vector<8x8xf32>
    %cst_28 = arith.constant dense<0.000000e+00> : vector<8xf32>
    %63 = vector.multi_reduction <add>, %62, %cst_28 [1] : vector<8x8xf32> to vector<8xf32>
    %64 = vector.shape_cast %63 : vector<8xf32> to vector<8x1xf32>
    %cst_29 = arith.constant 1.000000e-30 : f32
    %65 = vector.broadcast %cst_29 : f32 to vector<8x1xf32>
    %66 = arith.maximumf %64, %65 : vector<8x1xf32>
    %67 = tpu.reciprocal %66 {approx = true} : vector<8x1xf32> -> vector<8x1xf32>
    %68 = vector.broadcast %67 : vector<8x1xf32> to vector<8x8xf32>
    %69 = arith.mulf %62, %68 : vector<8x8xf32>
    %70 = arith.truncf %69 : vector<8x8xf32> to vector<8x8xbf16>
    %71 = vector.extract_strided_slice %30 {offsets = [0, 16], sizes = [8, 16], strides = [1, 1]} : vector<8x32xbf16> to vector<8x16xbf16>
    %cst_30 = arith.constant dense<0.000000e+00> : vector<8x16xf32>
    %72 = tpu.matmul %70, %71, %cst_30 {dimension_numbers = #tpu.dot_dimension_numbers<[1], [0], [0], [1], [0, 0, 1, 1], [], []>} : vector<8x8xbf16>, vector<8x16xbf16>, vector<8x16xf32> -> vector<8x16xf32>
    %73 = tpu.concatenate %52, %72 in 1 : vector<8x16xf32>, vector<8x16xf32> -> vector<8x32xf32>
    %74 = vector.extract_strided_slice %25 {offsets = [8, 0], sizes = [8, 32], strides = [1, 1]} : vector<16x32xbf16> to vector<8x32xbf16>
    %75 = vector.extract_strided_slice %26 {offsets = [8, 0], sizes = [8, 32], strides = [1, 1]} : vector<16x32xbf16> to vector<8x32xbf16>
    %76 = vector.extract_strided_slice %27 {offsets = [8, 0], sizes = [8, 32], strides = [1, 1]} : vector<16x32xbf16> to vector<8x32xbf16>
    %77 = vector.extract_strided_slice %18 {offsets = [1, 0, 0], sizes = [1, 1, 8], strides = [1, 1, 1]} : vector<2x1x8xf32> to vector<1x1x8xf32>
    %78 = vector.shape_cast %77 : vector<1x1x8xf32> to vector<1x8xf32>
    %79 = vector.extract_strided_slice %74 {offsets = [0, 0], sizes = [8, 16], strides = [1, 1]} : vector<8x32xbf16> to vector<8x16xbf16>
    %80 = vector.extract_strided_slice %75 {offsets = [0, 0], sizes = [8, 16], strides = [1, 1]} : vector<8x32xbf16> to vector<8x16xbf16>
    %cst_31 = arith.constant dense<0.000000e+00> : vector<8x8xf32>
    %81 = tpu.matmul %79, %80, %cst_31 {dimension_numbers = #tpu.dot_dimension_numbers<[1], [1], [0], [0], [0, 0, 1, 0], [], []>} : vector<8x16xbf16>, vector<8x16xbf16>, vector<8x8xf32> -> vector<8x8xf32>
    %82 = vector.broadcast %78 : vector<1x8xf32> to vector<8x8xf32>
    %83 = arith.addf %81, %82 : vector<8x8xf32>
    %cst_32 = arith.constant dense<0xFF800000> : vector<8xf32>
    %84 = vector.multi_reduction <maximumf>, %83, %cst_32 [1] : vector<8x8xf32> to vector<8xf32>
    %85 = vector.shape_cast %84 : vector<8xf32> to vector<8x1xf32>
    %86 = vector.broadcast %85 : vector<8x1xf32> to vector<8x8xf32>
    %87 = arith.subf %83, %86 : vector<8x8xf32>
    %88 = math.exp %87 : vector<8x8xf32>
    %cst_33 = arith.constant dense<0.000000e+00> : vector<8xf32>
    %89 = vector.multi_reduction <add>, %88, %cst_33 [1] : vector<8x8xf32> to vector<8xf32>
    %90 = vector.shape_cast %89 : vector<8xf32> to vector<8x1xf32>
    %cst_34 = arith.constant 1.000000e-30 : f32
    %91 = vector.broadcast %cst_34 : f32 to vector<8x1xf32>
    %92 = arith.maximumf %90, %91 : vector<8x1xf32>
    %93 = tpu.reciprocal %92 {approx = true} : vector<8x1xf32> -> vector<8x1xf32>
    %94 = vector.broadcast %93 : vector<8x1xf32> to vector<8x8xf32>
    %95 = arith.mulf %88, %94 : vector<8x8xf32>
    %96 = arith.truncf %95 : vector<8x8xf32> to vector<8x8xbf16>
    %97 = vector.extract_strided_slice %76 {offsets = [0, 0], sizes = [8, 16], strides = [1, 1]} : vector<8x32xbf16> to vector<8x16xbf16>
    %cst_35 = arith.constant dense<0.000000e+00> : vector<8x16xf32>
    %98 = tpu.matmul %96, %97, %cst_35 {dimension_numbers = #tpu.dot_dimension_numbers<[1], [0], [0], [1], [0, 0, 1, 1], [], []>} : vector<8x8xbf16>, vector<8x16xbf16>, vector<8x16xf32> -> vector<8x16xf32>
    %99 = vector.extract_strided_slice %74 {offsets = [0, 16], sizes = [8, 16], strides = [1, 1]} : vector<8x32xbf16> to vector<8x16xbf16>
    %100 = vector.extract_strided_slice %75 {offsets = [0, 16], sizes = [8, 16], strides = [1, 1]} : vector<8x32xbf16> to vector<8x16xbf16>
    %cst_36 = arith.constant dense<0.000000e+00> : vector<8x8xf32>
    %101 = tpu.matmul %99, %100, %cst_36 {dimension_numbers = #tpu.dot_dimension_numbers<[1], [1], [0], [0], [0, 0, 1, 0], [], []>} : vector<8x16xbf16>, vector<8x16xbf16>, vector<8x8xf32> -> vector<8x8xf32>
    %102 = vector.broadcast %78 : vector<1x8xf32> to vector<8x8xf32>
    %103 = arith.addf %101, %102 : vector<8x8xf32>
    %cst_37 = arith.constant dense<0xFF800000> : vector<8xf32>
    %104 = vector.multi_reduction <maximumf>, %103, %cst_37 [1] : vector<8x8xf32> to vector<8xf32>
    %105 = vector.shape_cast %104 : vector<8xf32> to vector<8x1xf32>
    %106 = vector.broadcast %105 : vector<8x1xf32> to vector<8x8xf32>
    %107 = arith.subf %103, %106 : vector<8x8xf32>
    %108 = math.exp %107 : vector<8x8xf32>
    %cst_38 = arith.constant dense<0.000000e+00> : vector<8xf32>
    %109 = vector.multi_reduction <add>, %108, %cst_38 [1] : vector<8x8xf32> to vector<8xf32>
    %110 = vector.shape_cast %109 : vector<8xf32> to vector<8x1xf32>
    %cst_39 = arith.constant 1.000000e-30 : f32
    %111 = vector.broadcast %cst_39 : f32 to vector<8x1xf32>
    %112 = arith.maximumf %110, %111 : vector<8x1xf32>
    %113 = tpu.reciprocal %112 {approx = true} : vector<8x1xf32> -> vector<8x1xf32>
    %114 = vector.broadcast %113 : vector<8x1xf32> to vector<8x8xf32>
    %115 = arith.mulf %108, %114 : vector<8x8xf32>
    %116 = arith.truncf %115 : vector<8x8xf32> to vector<8x8xbf16>
    %117 = vector.extract_strided_slice %76 {offsets = [0, 16], sizes = [8, 16], strides = [1, 1]} : vector<8x32xbf16> to vector<8x16xbf16>
    %cst_40 = arith.constant dense<0.000000e+00> : vector<8x16xf32>
    %118 = tpu.matmul %116, %117, %cst_40 {dimension_numbers = #tpu.dot_dimension_numbers<[1], [0], [0], [1], [0, 0, 1, 1], [], []>} : vector<8x8xbf16>, vector<8x16xbf16>, vector<8x16xf32> -> vector<8x16xf32>
    %119 = tpu.concatenate %98, %118 in 1 : vector<8x16xf32>, vector<8x16xf32> -> vector<8x32xf32>
    %120 = tpu.concatenate %73, %119 in 0 : vector<8x32xf32>, vector<8x32xf32> -> vector<16x32xf32>
    %121 = arith.truncf %120 : vector<16x32xf32> to vector<16x32xbf16>
    %c0_41 = arith.constant 0 : index
    %c96 = arith.constant 96 : index
    %122 = vector.load %arg8[%c0_41, %c96] : memref<32x128xbf16, #tpu.memory_space<vmem>>, vector<32x32xbf16>
    %cst_42 = arith.constant dense<0.000000e+00> : vector<16x32xf32>
    %123 = tpu.matmul %121, %122, %cst_42 {dimension_numbers = #tpu.dot_dimension_numbers<[1], [0], [0], [1], [0, 0, 1, 1], [], []>} : vector<16x32xbf16>, vector<32x32xbf16>, vector<16x32xf32> -> vector<16x32xf32>
    %c0_43 = arith.constant 0 : index
    %c96_44 = arith.constant 96 : index
    %124 = vector.load %arg9[%c0_43, %c96_44] : memref<1x224xf32, #tpu.memory_space<vmem>>, vector<1x32xf32>
    %125 = vector.broadcast %124 : vector<1x32xf32> to vector<16x32xf32>
    %126 = arith.addf %123, %125 : vector<16x32xf32>
    %127 = arith.truncf %126 : vector<16x32xf32> to vector<16x32xbf16>
    %128 = tpu.concatenate %17, %127 in 1 : vector<16x32xbf16>, vector<16x32xbf16> -> vector<16x64xbf16>
    %c0_45 = arith.constant 0 : index
    %c0_46 = arith.constant 0 : index
    %129 = vector.load %arg10[%c0_45, %c0_46] : memref<64x96xbf16, #tpu.memory_space<vmem>>, vector<64x64xbf16>
    %cst_47 = arith.constant dense<0.000000e+00> : vector<16x64xf32>
    %130 = tpu.matmul %128, %129, %cst_47 {dimension_numbers = #tpu.dot_dimension_numbers<[1], [0], [0], [1], [0, 0, 1, 1], [], []>} : vector<16x64xbf16>, vector<64x64xbf16>, vector<16x64xf32> -> vector<16x64xf32>
    %c0_48 = arith.constant 0 : index
    %c128 = arith.constant 128 : index
    %131 = vector.load %arg9[%c0_48, %c128] : memref<1x224xf32, #tpu.memory_space<vmem>>, vector<1x64xf32>
    %132 = vector.broadcast %131 : vector<1x64xf32> to vector<16x64xf32>
    %133 = arith.addf %130, %132 : vector<16x64xf32>
    %cst_49 = arith.constant 0.000000e+00 : f32
    %134 = vector.broadcast %cst_49 : f32 to vector<16x64xf32>
    %135 = arith.maximumf %133, %134 : vector<16x64xf32>
    %136 = arith.truncf %135 : vector<16x64xf32> to vector<16x64xbf16>
    %c0_50 = arith.constant 0 : index
    %c64 = arith.constant 64 : index
    %137 = vector.load %arg10[%c0_50, %c64] : memref<64x96xbf16, #tpu.memory_space<vmem>>, vector<64x32xbf16>
    %cst_51 = arith.constant dense<0.000000e+00> : vector<16x32xf32>
    %138 = tpu.matmul %136, %137, %cst_51 {dimension_numbers = #tpu.dot_dimension_numbers<[1], [0], [0], [1], [0, 0, 1, 1], [], []>} : vector<16x64xbf16>, vector<64x32xbf16>, vector<16x32xf32> -> vector<16x32xf32>
    %c0_52 = arith.constant 0 : index
    %c192 = arith.constant 192 : index
    %139 = vector.load %arg9[%c0_52, %c192] : memref<1x224xf32, #tpu.memory_space<vmem>>, vector<1x32xf32>
    %140 = vector.broadcast %139 : vector<1x32xf32> to vector<16x32xf32>
    %141 = arith.addf %138, %140 : vector<16x32xf32>
    %142 = arith.addf %16, %141 : vector<16x32xf32>
    %c0_53 = arith.constant 0 : index
    %c0_54 = arith.constant 0 : index
    %143 = vector.load %arg11[%c0_53, %c0_54] : memref<16x32xf32, #tpu.memory_space<vmem>>, vector<16x32xf32>
    tpu.vector_store %arg11[%c0_53, %c0_54], %142 {strides = array<i32>} : memref<16x32xf32, #tpu.memory_space<vmem>>, vector<16x32xf32>,
    return
  }
  func.func @transform_0(%arg0: i32) -> (i32, i32) {
    %c0_i32 = arith.constant 0 : i32
    %c0_i32_0 = arith.constant 0 : i32
    return %arg0, %c0_i32 : i32, i32
  }
  func.func @transform_1(%arg0: i32) -> (i32, i32, i32) {
    %c0_i32 = arith.constant 0 : i32
    %c0_i32_0 = arith.constant 0 : i32
    %c0_i32_1 = arith.constant 0 : i32
    return %arg0, %c0_i32, %c0_i32_0 : i32, i32, i32
  }
  func.func @transform_2(%arg0: i32) -> (i32, i32) {
    %c0_i32 = arith.constant 0 : i32
    %c0_i32_0 = arith.constant 0 : i32
    return %arg0, %c0_i32 : i32, i32
  }
  func.func @transform_3(%arg0: i32) -> (i32, i32) {
    %c0_i32 = arith.constant 0 : i32
    %c0_i32_0 = arith.constant 0 : i32
    %c0_i32_1 = arith.constant 0 : i32
    return %c0_i32, %c0_i32_0 : i32, i32
  }
  func.func @transform_4(%arg0: i32) -> (i32, i32) {
    %c0_i32 = arith.constant 0 : i32
    %c0_i32_0 = arith.constant 0 : i32
    %c0_i32_1 = arith.constant 0 : i32
    return %c0_i32, %c0_i32_0 : i32, i32
  }
  func.func @transform_5(%arg0: i32) -> (i32, i32) {
    %c0_i32 = arith.constant 0 : i32
    %c0_i32_0 = arith.constant 0 : i32
    %c0_i32_1 = arith.constant 0 : i32
    return %c0_i32, %c0_i32_0 : i32, i32
  }
  func.func @transform_6(%arg0: i32) -> (i32, i32) {
    %c0_i32 = arith.constant 0 : i32
    %c0_i32_0 = arith.constant 0 : i32
    %c0_i32_1 = arith.constant 0 : i32
    return %c0_i32, %c0_i32_0 : i32, i32
  }
  func.func @transform_7(%arg0: i32) -> (i32, i32) {
    %c0_i32 = arith.constant 0 : i32
    %c0_i32_0 = arith.constant 0 : i32
    %c0_i32_1 = arith.constant 0 : i32
    return %c0_i32, %c0_i32_0 : i32, i32
  }
  func.func @transform_8(%arg0: i32) -> (i32, i32) {
    %c0_i32 = arith.constant 0 : i32
    %c0_i32_0 = arith.constant 0 : i32
    %c0_i32_1 = arith.constant 0 : i32
    return %c0_i32, %c0_i32_0 : i32, i32
  }
  func.func @transform_9(%arg0: i32) -> (i32, i32) {
    %c0_i32 = arith.constant 0 : i32
    %c0_i32_0 = arith.constant 0 : i32
    %c0_i32_1 = arith.constant 0 : i32
    return %c0_i32, %c0_i32_0 : i32, i32
  }
  func.func @transform_10(%arg0: i32) -> (i32, i32) {
    %c0_i32 = arith.constant 0 : i32
    %c0_i32_0 = arith.constant 0 : i32
    return %arg0, %c0_i32 : i32, i32
  }
}

module attributes {stable_mosaic.version = 11 : i64} {
  func.func @_attn_agg_kernel(%arg0: i32, %arg1: memref<8x32xf32, #tpu.memory_space<vmem>>, %arg2: memref<8x32xf32, #tpu.memory_space<vmem>>, %arg3: memref<1x1x8xf32, #tpu.memory_space<vmem>>, %arg4: memref<32x128xbf16, #tpu.memory_space<vmem>>, %arg5: memref<1x224xf32, #tpu.memory_space<vmem>>, %arg6: memref<64x96xbf16, #tpu.memory_space<vmem>>, %arg7: memref<8x32xf32, #tpu.memory_space<vmem>>) attributes {dimension_semantics = [#tpu.dimension_semantics<parallel>], iteration_bounds = array<i64: 2>, scalar_prefetch = 0 : i64, scratch_operands = 0 : i64, tpu.core_type = #tpu.core_type<tc>, window_params = [{transform_indices = @transform_0, window_bounds = array<i64: 8, 32>}, {transform_indices = @transform_1, window_bounds = array<i64: 8, 32>}, {transform_indices = @transform_2, window_bounds = array<i64: 1, 1, 8>}, {pipeline_mode = #tpu.pipeline_mode<synchronous>, transform_indices = @transform_3, window_bounds = array<i64: 32, 128>}, {pipeline_mode = #tpu.pipeline_mode<synchronous>, transform_indices = @transform_4, window_bounds = array<i64: 1, 224>}, {pipeline_mode = #tpu.pipeline_mode<synchronous>, transform_indices = @transform_5, window_bounds = array<i64: 64, 96>}, {transform_indices = @transform_6, window_bounds = array<i64: 8, 32>}]} {
    %c0 = arith.constant 0 : index
    %c0_0 = arith.constant 0 : index
    %0 = vector.load %arg1[%c0, %c0_0] : memref<8x32xf32, #tpu.memory_space<vmem>>, vector<8x32xf32>
    %1 = arith.truncf %0 : vector<8x32xf32> to vector<8x32xbf16>
    %c0_1 = arith.constant 0 : index
    %c0_2 = arith.constant 0 : index
    %c0_3 = arith.constant 0 : index
    %2 = vector.load %arg3[%c0_1, %c0_2, %c0_3] : memref<1x1x8xf32, #tpu.memory_space<vmem>>, vector<1x1x8xf32>
    %c0_4 = arith.constant 0 : index
    %c0_5 = arith.constant 0 : index
    %3 = vector.load %arg2[%c0_4, %c0_5] : memref<8x32xf32, #tpu.memory_space<vmem>>, vector<8x32xf32>
    %4 = arith.truncf %3 : vector<8x32xf32> to vector<8x32xbf16>
    %c0_6 = arith.constant 0 : index
    %c0_7 = arith.constant 0 : index
    %5 = vector.load %arg4[%c0_6, %c0_7] : memref<32x128xbf16, #tpu.memory_space<vmem>>, vector<32x32xbf16>
    %cst = arith.constant dense<0.000000e+00> : vector<8x32xf32>
    %6 = tpu.matmul %1, %5, %cst {dimension_numbers = #tpu.dot_dimension_numbers<[1], [0], [0], [1], [0, 0, 1, 1], [], []>} : vector<8x32xbf16>, vector<32x32xbf16>, vector<8x32xf32> -> vector<8x32xf32>
    %c0_8 = arith.constant 0 : index
    %c0_9 = arith.constant 0 : index
    %7 = vector.load %arg5[%c0_8, %c0_9] : memref<1x224xf32, #tpu.memory_space<vmem>>, vector<1x32xf32>
    %8 = vector.broadcast %7 : vector<1x32xf32> to vector<8x32xf32>
    %9 = arith.addf %6, %8 : vector<8x32xf32>
    %c0_10 = arith.constant 0 : index
    %c32 = arith.constant 32 : index
    %10 = vector.load %arg4[%c0_10, %c32] : memref<32x128xbf16, #tpu.memory_space<vmem>>, vector<32x64xbf16>
    %cst_11 = arith.constant dense<0.000000e+00> : vector<8x64xf32>
    %11 = tpu.matmul %4, %10, %cst_11 {dimension_numbers = #tpu.dot_dimension_numbers<[1], [0], [0], [1], [0, 0, 1, 1], [], []>} : vector<8x32xbf16>, vector<32x64xbf16>, vector<8x64xf32> -> vector<8x64xf32>
    %c0_12 = arith.constant 0 : index
    %c32_13 = arith.constant 32 : index
    %12 = vector.load %arg5[%c0_12, %c32_13] : memref<1x224xf32, #tpu.memory_space<vmem>>, vector<1x64xf32>
    %13 = vector.broadcast %12 : vector<1x64xf32> to vector<8x64xf32>
    %14 = arith.addf %11, %13 : vector<8x64xf32>
    %15 = arith.truncf %9 : vector<8x32xf32> to vector<8x32xbf16>
    %16 = arith.truncf %14 : vector<8x64xf32> to vector<8x64xbf16>
    %17 = vector.extract_strided_slice %16 {offsets = [0, 0], sizes = [8, 32], strides = [1, 1]} : vector<8x64xbf16> to vector<8x32xbf16>
    %18 = vector.extract_strided_slice %16 {offsets = [0, 32], sizes = [8, 32], strides = [1, 1]} : vector<8x64xbf16> to vector<8x32xbf16>
    %19 = vector.shape_cast %2 : vector<1x1x8xf32> to vector<1x8xf32>
    %20 = vector.extract_strided_slice %15 {offsets = [0, 0], sizes = [8, 16], strides = [1, 1]} : vector<8x32xbf16> to vector<8x16xbf16>
    %21 = vector.extract_strided_slice %17 {offsets = [0, 0], sizes = [8, 16], strides = [1, 1]} : vector<8x32xbf16> to vector<8x16xbf16>
    %cst_14 = arith.constant dense<0.000000e+00> : vector<8x8xf32>
    %22 = tpu.matmul %20, %21, %cst_14 {dimension_numbers = #tpu.dot_dimension_numbers<[1], [1], [0], [0], [0, 0, 1, 0], [], []>} : vector<8x16xbf16>, vector<8x16xbf16>, vector<8x8xf32> -> vector<8x8xf32>
    %23 = vector.broadcast %19 : vector<1x8xf32> to vector<8x8xf32>
    %24 = arith.addf %22, %23 : vector<8x8xf32>
    %cst_15 = arith.constant dense<0xFF800000> : vector<8xf32>
    %25 = vector.multi_reduction <maximumf>, %24, %cst_15 [1] : vector<8x8xf32> to vector<8xf32>
    %26 = vector.shape_cast %25 : vector<8xf32> to vector<8x1xf32>
    %27 = vector.broadcast %26 : vector<8x1xf32> to vector<8x8xf32>
    %28 = arith.subf %24, %27 : vector<8x8xf32>
    %29 = math.exp %28 : vector<8x8xf32>
    %cst_16 = arith.constant dense<0.000000e+00> : vector<8xf32>
    %30 = vector.multi_reduction <add>, %29, %cst_16 [1] : vector<8x8xf32> to vector<8xf32>
    %31 = vector.shape_cast %30 : vector<8xf32> to vector<8x1xf32>
    %cst_17 = arith.constant 1.000000e-30 : f32
    %32 = vector.broadcast %cst_17 : f32 to vector<8x1xf32>
    %33 = arith.maximumf %31, %32 : vector<8x1xf32>
    %34 = tpu.reciprocal %33 {approx = true} : vector<8x1xf32> -> vector<8x1xf32>
    %35 = vector.broadcast %34 : vector<8x1xf32> to vector<8x8xf32>
    %36 = arith.mulf %29, %35 : vector<8x8xf32>
    %37 = arith.truncf %36 : vector<8x8xf32> to vector<8x8xbf16>
    %38 = vector.extract_strided_slice %18 {offsets = [0, 0], sizes = [8, 16], strides = [1, 1]} : vector<8x32xbf16> to vector<8x16xbf16>
    %cst_18 = arith.constant dense<0.000000e+00> : vector<8x16xf32>
    %39 = tpu.matmul %37, %38, %cst_18 {dimension_numbers = #tpu.dot_dimension_numbers<[1], [0], [0], [1], [0, 0, 1, 1], [], []>} : vector<8x8xbf16>, vector<8x16xbf16>, vector<8x16xf32> -> vector<8x16xf32>
    %40 = vector.extract_strided_slice %15 {offsets = [0, 16], sizes = [8, 16], strides = [1, 1]} : vector<8x32xbf16> to vector<8x16xbf16>
    %41 = vector.extract_strided_slice %17 {offsets = [0, 16], sizes = [8, 16], strides = [1, 1]} : vector<8x32xbf16> to vector<8x16xbf16>
    %cst_19 = arith.constant dense<0.000000e+00> : vector<8x8xf32>
    %42 = tpu.matmul %40, %41, %cst_19 {dimension_numbers = #tpu.dot_dimension_numbers<[1], [1], [0], [0], [0, 0, 1, 0], [], []>} : vector<8x16xbf16>, vector<8x16xbf16>, vector<8x8xf32> -> vector<8x8xf32>
    %43 = vector.broadcast %19 : vector<1x8xf32> to vector<8x8xf32>
    %44 = arith.addf %42, %43 : vector<8x8xf32>
    %cst_20 = arith.constant dense<0xFF800000> : vector<8xf32>
    %45 = vector.multi_reduction <maximumf>, %44, %cst_20 [1] : vector<8x8xf32> to vector<8xf32>
    %46 = vector.shape_cast %45 : vector<8xf32> to vector<8x1xf32>
    %47 = vector.broadcast %46 : vector<8x1xf32> to vector<8x8xf32>
    %48 = arith.subf %44, %47 : vector<8x8xf32>
    %49 = math.exp %48 : vector<8x8xf32>
    %cst_21 = arith.constant dense<0.000000e+00> : vector<8xf32>
    %50 = vector.multi_reduction <add>, %49, %cst_21 [1] : vector<8x8xf32> to vector<8xf32>
    %51 = vector.shape_cast %50 : vector<8xf32> to vector<8x1xf32>
    %cst_22 = arith.constant 1.000000e-30 : f32
    %52 = vector.broadcast %cst_22 : f32 to vector<8x1xf32>
    %53 = arith.maximumf %51, %52 : vector<8x1xf32>
    %54 = tpu.reciprocal %53 {approx = true} : vector<8x1xf32> -> vector<8x1xf32>
    %55 = vector.broadcast %54 : vector<8x1xf32> to vector<8x8xf32>
    %56 = arith.mulf %49, %55 : vector<8x8xf32>
    %57 = arith.truncf %56 : vector<8x8xf32> to vector<8x8xbf16>
    %58 = vector.extract_strided_slice %18 {offsets = [0, 16], sizes = [8, 16], strides = [1, 1]} : vector<8x32xbf16> to vector<8x16xbf16>
    %cst_23 = arith.constant dense<0.000000e+00> : vector<8x16xf32>
    %59 = tpu.matmul %57, %58, %cst_23 {dimension_numbers = #tpu.dot_dimension_numbers<[1], [0], [0], [1], [0, 0, 1, 1], [], []>} : vector<8x8xbf16>, vector<8x16xbf16>, vector<8x16xf32> -> vector<8x16xf32>
    %60 = tpu.concatenate %39, %59 in 1 : vector<8x16xf32>, vector<8x16xf32> -> vector<8x32xf32>
    %61 = arith.truncf %60 : vector<8x32xf32> to vector<8x32xbf16>
    %c0_24 = arith.constant 0 : index
    %c96 = arith.constant 96 : index
    %62 = vector.load %arg4[%c0_24, %c96] : memref<32x128xbf16, #tpu.memory_space<vmem>>, vector<32x32xbf16>
    %cst_25 = arith.constant dense<0.000000e+00> : vector<8x32xf32>
    %63 = tpu.matmul %61, %62, %cst_25 {dimension_numbers = #tpu.dot_dimension_numbers<[1], [0], [0], [1], [0, 0, 1, 1], [], []>} : vector<8x32xbf16>, vector<32x32xbf16>, vector<8x32xf32> -> vector<8x32xf32>
    %c0_26 = arith.constant 0 : index
    %c96_27 = arith.constant 96 : index
    %64 = vector.load %arg5[%c0_26, %c96_27] : memref<1x224xf32, #tpu.memory_space<vmem>>, vector<1x32xf32>
    %65 = vector.broadcast %64 : vector<1x32xf32> to vector<8x32xf32>
    %66 = arith.addf %63, %65 : vector<8x32xf32>
    %67 = arith.truncf %66 : vector<8x32xf32> to vector<8x32xbf16>
    %68 = tpu.concatenate %1, %67 in 1 : vector<8x32xbf16>, vector<8x32xbf16> -> vector<8x64xbf16>
    %c0_28 = arith.constant 0 : index
    %c0_29 = arith.constant 0 : index
    %69 = vector.load %arg6[%c0_28, %c0_29] : memref<64x96xbf16, #tpu.memory_space<vmem>>, vector<64x64xbf16>
    %cst_30 = arith.constant dense<0.000000e+00> : vector<8x64xf32>
    %70 = tpu.matmul %68, %69, %cst_30 {dimension_numbers = #tpu.dot_dimension_numbers<[1], [0], [0], [1], [0, 0, 1, 1], [], []>} : vector<8x64xbf16>, vector<64x64xbf16>, vector<8x64xf32> -> vector<8x64xf32>
    %c0_31 = arith.constant 0 : index
    %c128 = arith.constant 128 : index
    %71 = vector.load %arg5[%c0_31, %c128] : memref<1x224xf32, #tpu.memory_space<vmem>>, vector<1x64xf32>
    %72 = vector.broadcast %71 : vector<1x64xf32> to vector<8x64xf32>
    %73 = arith.addf %70, %72 : vector<8x64xf32>
    %cst_32 = arith.constant 0.000000e+00 : f32
    %74 = vector.broadcast %cst_32 : f32 to vector<8x64xf32>
    %75 = arith.maximumf %73, %74 : vector<8x64xf32>
    %76 = arith.truncf %75 : vector<8x64xf32> to vector<8x64xbf16>
    %c0_33 = arith.constant 0 : index
    %c64 = arith.constant 64 : index
    %77 = vector.load %arg6[%c0_33, %c64] : memref<64x96xbf16, #tpu.memory_space<vmem>>, vector<64x32xbf16>
    %cst_34 = arith.constant dense<0.000000e+00> : vector<8x32xf32>
    %78 = tpu.matmul %76, %77, %cst_34 {dimension_numbers = #tpu.dot_dimension_numbers<[1], [0], [0], [1], [0, 0, 1, 1], [], []>} : vector<8x64xbf16>, vector<64x32xbf16>, vector<8x32xf32> -> vector<8x32xf32>
    %c0_35 = arith.constant 0 : index
    %c192 = arith.constant 192 : index
    %79 = vector.load %arg5[%c0_35, %c192] : memref<1x224xf32, #tpu.memory_space<vmem>>, vector<1x32xf32>
    %80 = vector.broadcast %79 : vector<1x32xf32> to vector<8x32xf32>
    %81 = arith.addf %78, %80 : vector<8x32xf32>
    %82 = arith.addf %0, %81 : vector<8x32xf32>
    %c0_36 = arith.constant 0 : index
    %c0_37 = arith.constant 0 : index
    %83 = vector.load %arg7[%c0_36, %c0_37] : memref<8x32xf32, #tpu.memory_space<vmem>>, vector<8x32xf32>
    tpu.vector_store %arg7[%c0_36, %c0_37], %82 {strides = array<i32>} : memref<8x32xf32, #tpu.memory_space<vmem>>, vector<8x32xf32>,
    return
  }
  func.func @transform_0(%arg0: i32) -> (i32, i32) {
    %c0_i32 = arith.constant 0 : i32
    %c0_i32_0 = arith.constant 0 : i32
    return %arg0, %c0_i32 : i32, i32
  }
  func.func @transform_1(%arg0: i32) -> (i32, i32) {
    %c0_i32 = arith.constant 0 : i32
    %c0_i32_0 = arith.constant 0 : i32
    return %arg0, %c0_i32 : i32, i32
  }
  func.func @transform_2(%arg0: i32) -> (i32, i32, i32) {
    %c0_i32 = arith.constant 0 : i32
    %c0_i32_0 = arith.constant 0 : i32
    %c0_i32_1 = arith.constant 0 : i32
    return %arg0, %c0_i32, %c0_i32_0 : i32, i32, i32
  }
  func.func @transform_3(%arg0: i32) -> (i32, i32) {
    %c0_i32 = arith.constant 0 : i32
    %c0_i32_0 = arith.constant 0 : i32
    %c0_i32_1 = arith.constant 0 : i32
    return %c0_i32, %c0_i32_0 : i32, i32
  }
  func.func @transform_4(%arg0: i32) -> (i32, i32) {
    %c0_i32 = arith.constant 0 : i32
    %c0_i32_0 = arith.constant 0 : i32
    %c0_i32_1 = arith.constant 0 : i32
    return %c0_i32, %c0_i32_0 : i32, i32
  }
  func.func @transform_5(%arg0: i32) -> (i32, i32) {
    %c0_i32 = arith.constant 0 : i32
    %c0_i32_0 = arith.constant 0 : i32
    %c0_i32_1 = arith.constant 0 : i32
    return %c0_i32, %c0_i32_0 : i32, i32
  }
  func.func @transform_6(%arg0: i32) -> (i32, i32) {
    %c0_i32 = arith.constant 0 : i32
    %c0_i32_0 = arith.constant 0 : i32
    return %arg0, %c0_i32 : i32, i32
  }
}

</mosaic_0001>

<bundles_post_ra>
// kernel: attentional_graph_forward.3
= control target key start
LH: loop header
LB: loop body
LE: loop exit
PB: predicated region body
PF: predicated region fallthrough
CT: control target
= control target key end

     0   :  { %s1162_s13 = smov 0   ;;  %s1314_s0 = inlined_call_operand.vmem [shape: f32[32,32], index: 0, kind: input, shape index: {}]   ;;  %s1315_s1 = inlined_call_operand.vmem [shape: f32[4,1,8], index: 1, kind: input, shape index: {}]   ;;  %s1316_s2 = inlined_call_operand.vmem [shape: f32[32,8], index: 2, kind: input, shape index: {}]   ;;  %s1317_s3 = inlined_call_operand.vmem [shape: bf16[8,32], index: 3, kind: input, shape index: {}]   ;;  %s1318_s4 = inlined_call_operand.vmem [shape: f32[1,32], index: 4, kind: input, shape index: {}]   ;;  %s1319_s5 = inlined_call_operand.vmem [shape: bf16[32,32], index: 5, kind: input, shape index: {}]   ;;  %s1320_s6 = inlined_call_operand.vmem [shape: f32[1,32], index: 6, kind: input, shape index: {}]   ;;  %s1321_s7 = inlined_call_operand.vmem [shape: bf16[32,128], index: 7, kind: input, shape index: {}]   ;;  %s1322_s8 = inlined_call_operand.vmem [shape: f32[1,224], index: 8, kind: input, shape index: {}]   ;;  %s1323_s9 = inlined_call_operand.vmem [shape: bf16[64,96], index: 9, kind: input, shape index: {}]   ;;  %s1324_s10 = inlined_call_operand.vmem [shape: f32[32,32], index: 10, kind: output, shape index: {}]  }
   0x1 LB: > { %s982_s14 = sadd.s32 4294967295, %s1098_s13   ;;  %p986_p0 = scmp.ge.s32.totalorder %s1098_s13, 1  ;;  %s1098_s13 = sphi %s1162_s13, %s20_s13  }
   0x2   : > { %p334_p1 = scmp.lt.s32.totalorder %s1098_s13, 3 }
   0x4   : > { %p335_p2 = pnand %p986_p0, %p334_p1 }
   0x5   : > { %s987_s17 = sshll.u32 (!%p335_p2), %s982_s14, 1  ;;  %s1100_s22 = smov (!%p335_p2), 96  }
   0x6   : > { %338 = sbr.rel (%p335_p2) target bundleno = 1740 (0x6cc), region = 60  ;;  %p382_p3 = scmp.lt.s32.totalorder (!%p335_p2), %s987_s17, 3 }
   0x7   : > { %s1101_s23 = smov (!%p335_p2), 80   ;;  %s1102_s24 = smov (!%p335_p2), 112  }
   0x8   : > { %s1104_s28 = smov (!%p335_p2), 64   ;;  %s1105_s29 = smov (!%p335_p2), 32  }
   0x9   : > { %s1106_s30 = smov (!%p335_p2), 16  }
   0xb   : > { %v410_v0 = vld [vmem:[%s1317_s3] sm:$0xf]  ;;  %vm419_vm0 = vcmask 1043456   ;;  %s1326_s17 = smov (!%p382_p3, %s987_s17), 3  ;;  %vm415_vm1 = vcmask 64512   ;;  %v1043_v5 = vld [vmem:[%s1319_s5 + $0x8] sm:$0xff] }
   0xc   : > { %v421_v1 = vsel %vm419_vm0, %v410_v0, 0  ;;  %s1177_s18 = sshll.u32 %s1326_s17, 3  ;;  %470 = vmatpush.bf16.msra.mxu1 %v1043_v5  ;;  %v1042_v6 = vld [vmem:[%s1319_s5] sm:$0xff]  ;;  %vm460_vm2 = vcmask 261120   ;;  %v1197_v15 = vld [vmem:[%s1321_s7 + $0x8] sm:$0xff]  ;;  %s390_s27 = scalar_lea.vmem %s1315_s1, %s1326_s17  ;;  %vm536_vm3 = vcmask 130048  }
   0xd   : > { %430 = vmatpush.bf16.msra.mxu0 %v421_v1  ;;  %s396_s21 = scalar_lea.vmem %s1316_s2, %s1177_s18  ;;  %v1070_v8 = vld [vmem:[%s1318_s4] ss:$0 sm:$0xff]  ;;  %518 = vmatpush.bf16.msra.mxu2 %v1197_v15  ;;  %s385_s19 = scalar_lea.vmem %s1314_s0, %s1177_s18  ;;  %v1074_v60 = vld [vmem:[%s390_s27 + $0x1] ss:$0 sm:$0xff]  ;;  %vm849_vm4 = vcmask 523264  }
   0xe   : > { %v407_v2 = vld [vmem:[%s396_s21] sm:$0xff]  ;;  %v408_v3 = vld [vmem:[%s396_s21 + $0x8] sm:$0xff]  ;;  %s1103_s17 = smov 48   ;;  %s402_s26 = scalar_lea.vmem %s1324_s10, %s1177_s18 }
   0xf   : > { %v409_v4 = vpack.c.bf16 %v408_v3, %v407_v2  ;;  %v1203_v16 = vld [vmem:[%s1321_s7] sm:$0xff]  ;;  %v406_v22 = vld [vmem:[%s385_s19 + $0x8] sm:$0xff] }
  0x10   : > { %471 = vmatpush.bf16.msra.mxu1 %v1042_v6  ;;  %v1071_v17 = vld [vmem:[%s1320_s6] ss:$0 sm:$0xff] }
  0x11   : > { %994 = vmatmul.msk.bf16.vlgmr.msra.gmra.mxu0 %vm415_vm1, %v409_v4  ;;  %519 = vmatpush.bf16.msra.mxu2 %v1203_v16  ;;  %v405_v20 = vld [vmem:[%s385_s19] sm:$0xff] }
  0x12   : > { %v1228_v31 = vld [vmem:[%s1322_s8] ss:$0 sm:$0xff] }
  0x13   : > { %v1073_v52 = vld [vmem:[%s390_s27] ss:$0 sm:$0xff] }
  0x8e   : > { %v432_v7 = vpop.f32.mrf.mxu0 }
  0x8f   : > { %v433_v9 = vadd.f32 %v1070_v8, %v432_v7 }
  0x91   : > { %v437_v12 = vmax.f32 %v433_v9, 0.0 }
  0x96   : > { %v434_v10 = vpop.f32.mrf.mxu0 }
  0x97   : > { %v435_v11 = vadd.f32 %v1070_v8, %v434_v10 }
  0x99   : > { %v438_v13 = vmax.f32 %v435_v11, 0.0 }
  0x9b   : > { %v439_v14 = vpack.c.bf16 %v438_v13, %v437_v12 }
  0x9d   : > { %1003 = vmatmul.msk.bf16.vlgmr.msra.gmra.mxu1 %vm460_vm2, %v439_v14 }
 0x11a   : > { %v473_v18 = vpop.f32.mrf.mxu1 }
 0x11b   : > { %v474_v19 = vadd.f32 %v1071_v17, %v473_v18 }
 0x11d   : > { %v1213_v21 = vadd.f32 %v474_v19, %v405_v20 }
 0x11f   : > { %v480_v25 = vpack.c.bf16 %v1213_v21, %v1213_v21 }
 0x121   : > { %v494_v28 = vunpack.c.l.b16 %v480_v25 }
 0x122   : > { %v475_v23 = vpop.f32.mrf.mxu1 }
 0x123   : > { %v476_v24 = vadd.f32 %v1071_v17, %v475_v23 }
 0x125   : > { %v1217_v26 = vadd.f32 %v476_v24, %v406_v22 }
 0x127   : > { %v481_v27 = vpack.c.bf16 %v1217_v26, %v1217_v26 }
 0x129   : > { %v495_v29 = vunpack.c.l.b16 %v481_v27 }
 0x12b   : > { %v1221_v30 = vpack.c.b16 %v495_v29, %v494_v28 }
 0x12d   : > { %1012 = vmatmul.msk.bf16.vlgmr.msra.gmra.mxu2 %vm460_vm2, %v1221_v30 }
 0x1b0   : > { %v521_v32 = vpop.f32.mrf.mxu2 }
 0x1b1   : > { %v522_v33 = vadd.f32 %v1228_v31, %v521_v32 }
 0x1b3   : > { %v526_v34 = vpack.c.bf16 %v522_v33, %v522_v33 }
 0x1b5   : > { %v532_v35 = vunpack.c.l.b16 %v526_v34 }
 0x1b7   : > { %v1231_v36 = vpack.c.b16 %v532_v35, %v532_v35 }
 0x1b8   : > { %v523_v37 = vpop.f32.mrf.mxu2 }
 0x1b9   : > { %v524_v38 = vadd.f32 %v1228_v31, %v523_v37  ;;  %534 = vrot.lane.b32.xlu2 %v1231_v36, %s1100_s22  ;;  %592 = vrot.lane.b32.xlu0 %v1231_v36, %s1101_s23 }
 0x1bb   : > { %v527_v39 = vpack.c.bf16 %v524_v38, %v524_v38 }
 0x1bd   : > { %v656_v40 = vunpack.c.l.b16 %v527_v39 }
 0x1bf   : > { %v657_v41 = vpack.c.b16 %v656_v40, %v656_v40 }
 0x1c1   : > { %715 = vrot.lane.b32.xlu1 %v657_v41, %s1101_s23  ;;  %658 = vrot.lane.b32.xlu2 %v657_v41, %s1100_s22 }
 0x1c2   : > { %590 = vrot.lane.b32.xlu0 %v1231_v36, %s1102_s24 }
 0x1c9   : > { %713 = vrot.lane.b32.xlu1 %v657_v41, %s1102_s24 }
 0x213   : > { %v535_v42 = vpop.permute.xlu2 %534 }
 0x214   : > { %v541_v43 = vsel %vm536_vm3, %v535_v42, 0 }
 0x215   : > { %550 = vmatpush.bf16.xpose.msra.mxu3 %v541_v43 }
 0x21b   : > { %v659_v44 = vpop.permute.xlu2 %658 }
 0x21c   : > { %1013 = vmatmul.msk.bf16.vlgmr.msra.gmra.mxu3 %vm536_vm3, %v526_v34  ;;  %v664_v45 = vsel %vm536_vm3, %v659_v44, 0 }
 0x21d   : > { %673 = vmatpush.bf16.xpose.msrb.mxu3 %v664_v45 }
 0x22b   : > { %v593_v46 = vpop.permute.xlu0 %592 }
 0x22c   : > { %1017 = vmatmul.msk.bf16.vlgmr.msrb.gmra.mxu3 %vm536_vm3, %v527_v39  ;;  %v598_v47 = vsel %vm536_vm3, %v593_v46, 0 }
 0x22d   : > { %607 = vmatpush.bf16.xpose.msrb.mxu1 %v598_v47 }
 0x233   : > { %v716_v48 = vpop.permute.xlu1 %715 }
 0x234   : > { %v721_v49 = vsel %vm536_vm3, %v716_v48, 0  ;;  %v591_v50 = vpop.permute.xlu0 %590 }
 0x235   : > { %1015 = vmatmul.msk.bf16.vlgmr.msrb.gmra.mxu1 %vm536_vm3, %v591_v50 }
 0x236   : > { %730 = vmatpush.bf16.xpose.msra.mxu1 %v721_v49 }
 0x23b   : > { %v714_v51 = vpop.permute.xlu1 %713 }
 0x245   : > { %1019 = vmatmul.msk.bf16.vlgmr.msra.gmra.mxu1 %vm536_vm3, %v714_v51 }
 0x29f   : > { %v552_v53 = vpop.f32.mrf.mxu3 }
 0x2a0   : > { %v553_v54 = vadd.f32 %v1073_v52, %v552_v53 }
 0x2a2   : > { %v556_v55 = vsel %vm415_vm1, %v553_v54, -inf }
 0x2a3   : > { %557 = vmax.xlane.f32.xlu2 %v556_v55 }
 0x2a7   : > { %v554_v56 = vpop.f32.mrf.mxu3 }
 0x2af   : > { %v675_v57 = vpop.f32.mrf.mxu3 }
 0x2b0   : > { %v676_v63 = vadd.f32 %v1074_v60, %v675_v57 }
 0x2b2   : > { %v609_v58 = vpop.f32.mrf.mxu1  ;;  %v679_v1 = vsel %vm415_vm1, %v676_v63, -inf }
 0x2b3   : > { %v610_v59 = vadd.f32 %v1073_v52, %v609_v58 }
 0x2b5   : > { %v613_v61 = vsel %vm415_vm1, %v610_v59, -inf }
 0x2b6   : > { %614 = vmax.xlane.f32.xlu0 %v613_v61 }
 0x2b7   : > { %v677_v62 = vpop.f32.mrf.mxu3 }
 0x2ba   : > { %v611_v0 = vpop.f32.mrf.mxu1 }
 0x2be   : > { %680 = vmax.xlane.f32.xlu0 %v679_v1 }
 0x2c2   : > { %v732_v2 = vpop.f32.mrf.mxu1 }
 0x2c3   : > { %v733_v3 = vadd.f32 %v1074_v60, %v732_v2 }
 0x2c5   : > { %v736_v4 = vsel %vm415_vm1, %v733_v3, -inf }
 0x2c6   : > { %737 = vmax.xlane.f32.xlu1 %v736_v4 }
 0x2ca   : > { %v734_v5 = vpop.f32.mrf.mxu1 }
 0x2d2   : > { %749 = vrot.lane.b32.xlu0 %v657_v41, %s1103_s17 }
 0x2da   : > { %692 = vrot.lane.b32.xlu0 %v657_v41, %s1104_s28 }
 0x2df   : > { %626 = vrot.lane.b32.xlu1 %v1231_v36, %s1103_s17 }
 0x2e2   : > { %778 = vrot.lane.b32.xlu0 %v1197_v15, %s1105_s29 }
 0x316   : > { %v558_v6 = vpop.xlane.xlu2 %557 }
 0x317   : > { %v559_v9 = vsub.f32 %v553_v54, %v558_v6 }
 0x319   : > { %v560_v11 = vmul.f32 1.442695, %v559_v9 }
 0x329   : > { %v615_v7 = vpop.xlane.xlu0 %614 }
 0x32a   : > { %v616_v8 = vsub.f32 %v610_v59, %v615_v7 }
 0x32c   : > { %v617_v10 = vmul.f32 1.442695, %v616_v8 }
 0x32e   : > { %1076 = vpow2.f32 %v617_v10 }
 0x32f   : > { %1078 = vpow2.f32 %v560_v11  ;;  %v1049_v11 = vld [vmem:[%s1323_s9 + $0x18] sm:$0xff] }
 0x331   : > { %v681_v12 = vpop.xlane.xlu0 %680 }
 0x332   : > { %v682_v13 = vsub.f32 %v676_v63, %v681_v12  ;;  %v1048_v12 = vld [vmem:[%s1323_s9 + $0x10] sm:$0xff] }
 0x334   : > { %v1077_v14 = vpop.eup %1076  ;;  %v683_v17 = vmul.f32 1.442695, %v682_v13  ;;  %v1046_v13 = vld [vmem:[%s1323_s9] sm:$0xff] }
 0x335   : > { %v619_v18 = vsel %vm415_vm1, %v1077_v14, 0.0  ;;  %v1079_v20 = vpop.eup %1078 }
 0x336   : > { %1080 = vpow2.f32 %v683_v17  ;;  %620 = vadd.xlane.f32.xlu2 %v619_v18  ;;  %v562_v25 = vsel %vm415_vm1, %v1079_v20, 0.0 }
 0x339   : > { %v738_v19 = vpop.xlane.xlu1 %737 }
 0x33a   : > { %v739_v22 = vsub.f32 %v733_v3, %v738_v19 }
 0x33c   : > { %v1081_v23 = vpop.eup %1080  ;;  %v740_v24 = vmul.f32 1.442695, %v739_v22 }
 0x33d   : > { %v685_v27 = vsel %vm415_vm1, %v1081_v23, 0.0 }
 0x33e   : > { %1082 = vpow2.f32 %v740_v24  ;;  %563 = vadd.xlane.f32.xlu2 %v562_v25  ;;  %686 = vadd.xlane.f32.xlu1 %v685_v27 }
 0x344   : > { %v1083_v28 = vpop.eup %1082  ;;  %v750_v32 = vpop.permute.xlu0 %749 }
 0x345   : > { %v742_v29 = vsel %vm415_vm1, %v1083_v28, 0.0  ;;  %v755_v35 = vsel %vm419_vm0, %v750_v32, 0 }
 0x346   : > { %743 = vadd.xlane.f32.xlu2 %v742_v29 }
 0x34c   : > { %v693_v47 = vpop.permute.xlu0 %692 }
 0x34d   : > { %v698_v52 = vsel %vm419_vm0, %v693_v47, 0 }
 0x351   : > { %v627_v33 = vpop.permute.xlu1 %626 }
 0x352   : > { %v632_v34 = vsel %vm419_vm0, %v627_v33, 0 }
 0x353   : > { %641 = vmatpush.bf16.msrb.mxu2 %v632_v34 }
 0x354   : > { %v779_v61 = vpop.permute.xlu0 %778 }
 0x355   : > { %794 = vmatpush.bf16.msra.mxu3 %v779_v61 }
 0x357   : > { %764 = vmatpush.bf16.msra.mxu2 %v755_v35 }
 0x35e   : > { %569 = vrot.lane.b32.xlu2 %v1231_v36, %s1104_s28 }
 0x366   : > { %776 = vrot.lane.b32.xlu2 %v1203_v16, %s1105_s29 }
 0x3a9   : > { %v621_v37 = vpop.xlane.xlu2 %620 }
 0x3aa   : > { %v622_v38 = vmax.f32 %v621_v37, 1e-30 }
 0x3ac   : > { %1084 = vrcp.f32 %v622_v38 }
 0x3b1   : > { %v564_v39 = vpop.xlane.xlu2 %563  ;;  %v687_v48 = vpop.xlane.xlu1 %686 }
 0x3b2   : > { %v1085_v40 = vpop.eup %1084  ;;  %v565_v41 = vmax.f32 %v564_v39, 1e-30  ;;  %v688_v53 = vmax.f32 %v687_v48, 1e-30 }
 0x3b3   : > { %v624_v42 = vmul.f32 %v1085_v40, %v1077_v14 }
 0x3b4   : > { %1086 = vrcp.f32 %v565_v41 }
 0x3b5   : > { %v625_v43 = vpack.c.bf16 %v624_v42, %v624_v42 }
 0x3b7   : > { %1016 = vmatmul.msk.bf16.vlgmr.msrb.gmra.mxu2 %vm415_vm1, %v625_v43 }
 0x3b9   : > { %v744_v44 = vpop.xlane.xlu2 %743 }
 0x3ba   : > { %v745_v45 = vmax.f32 %v744_v44, 1e-30  ;;  %v1087_v46 = vpop.eup %1086 }
 0x3bb   : > { %v567_v49 = vmul.f32 %v1087_v46, %v1079_v20 }
 0x3bc   : > { %1088 = vrcp.f32 %v745_v45 }
 0x3bd   : > { %v568_v55 = vpack.c.bf16 %v567_v49, %v567_v49  ;;  %1090 = vrcp.f32 %v688_v53 }
 0x3c1   : > { %v570_v50 = vpop.permute.xlu2 %569 }
 0x3c2   : > { %v1089_v36 = vpop.eup %1088  ;;  %v575_v51 = vsel %vm419_vm0, %v570_v50, 0 }
 0x3c3   : > { %v747_v54 = vmul.f32 %v1089_v36, %v1083_v28  ;;  %584 = vmatpush.bf16.msrb.mxu0 %v575_v51  ;;  %v1091_v57 = vpop.eup %1090  ;;  %v1075_v28 = vld [vmem:[%s1322_s8 + $0x1] ss:$0 sm:$0xff] }
 0x3c4   : > { %v690_v58 = vmul.f32 %v1091_v57, %v1081_v23 }
 0x3c5   : > { %v748_v56 = vpack.c.bf16 %v747_v54, %v747_v54 }
 0x3c6   : > { %1014 = vmatmul.msk.bf16.vlgmr.msrb.gmra.mxu0 %vm415_vm1, %v568_v55  ;;  %v691_v59 = vpack.c.bf16 %v690_v58, %v690_v58 }
 0x3c7   : > { %707 = vmatpush.bf16.msra.mxu0 %v698_v52  ;;  %1020 = vmatmul.msk.bf16.vlgmr.msra.gmra.mxu2 %vm415_vm1, %v748_v56 }
 0x3c9   : > { %v777_v4 = vpop.permute.xlu2 %776 }
 0x3ca   : > { %795 = vmatpush.bf16.msra.mxu3 %v777_v4 }
 0x3cb   : > { %856 = vmatpush.bf16.msrb.mxu0 %v1049_v11 }
 0x3cf   : > { %857 = vmatpush.bf16.msrb.mxu0 %v1048_v12 }
 0x3d6   : > { %1018 = vmatmul.msk.bf16.vlgmr.msra.gmra.mxu0 %vm415_vm1, %v691_v59 }
 0x43a   : > { %v643_v60 = vpop.f32.mrf.mxu2 }
 0x442   : > { %v645_v62 = vpop.f32.mrf.mxu2 }
 0x443   : > { %v586_v63 = vpop.f32.mrf.mxu0 }
 0x44a   : > { %v766_v15 = vpop.f32.mrf.mxu2 }
 0x44b   : > { %v1065_v0 = vpack.i.bf16 %v766_v15, %v643_v60  ;;  %v588_v1 = vpop.f32.mrf.mxu0 }
 0x44d   : > { %1066 = vrot.lane.b32.xlu0 %v1065_v0, %s1106_s30 }
 0x452   : > { %v768_v16 = vpop.f32.mrf.mxu2 }
 0x453   : > { %v709_v2 = vpop.f32.mrf.mxu0 }
 0x455   : > { %782 = vrot.lane.b32.xlu0 %v1228_v31, %s1105_s29  ;;  %v1047_v31 = vld [vmem:[%s1323_s9 + $0x8] sm:$0xff] }
 0x456   : > { %871 = vrot.lane.b32.xlu1 %v1047_v31, %s1104_s28  ;;  %858 = vmatpush.bf16.msrb.mxu0 %v1047_v31 }
 0x45a   : > { %859 = vmatpush.bf16.msrb.mxu0 %v1046_v13 }
 0x45b   : > { %v711_v3 = vpop.f32.mrf.mxu0 }
 0x45d   : > { %875 = vrot.lane.b32.xlu0 %v1049_v11, %s1104_s28 }
 0x465   : > { %869 = vrot.lane.b32.xlu0 %v1046_v13, %s1104_s28 }
 0x4bf   : > { %v1067_v5 = vpop.permute.xlu0 %1066 }
 0x4c0   : > { %v1069_v6 = vunpack.i.h.bf16 %v1067_v5  ;;  %v1068_v7 = vunpack.i.l.bf16 %v1067_v5 }
 0x4c2   : > { %v774_v8 = vsel %vm536_vm3, %v709_v2, %v1069_v6  ;;  %v651_v9 = vsel %vm536_vm3, %v586_v63, %v1068_v7 }
 0x4c3   : > { %v775_v10 = vpack.c.bf16 %v774_v8, %v651_v9 }
 0x4c5   : > { %1021 = vmatmul.msk.bf16.vlgmr.msra.gmra.mxu3 %vm460_vm2, %v775_v10 }
 0x4c7   : > { %v783_v17 = vpop.permute.xlu0 %782 }
 0x4c8   : > { %v872_v35 = vpop.permute.xlu1 %871 }
 0x4cf   : > { %v876_v29 = vpop.permute.xlu0 %875 }
 0x4d0   : > { %891 = vmatpush.bf16.msrb.mxu1 %v876_v29 }
 0x4d7   : > { %v870_v37 = vpop.permute.xlu0 %869 }
 0x548   : > { %v797_v14 = vpop.f32.mrf.mxu3 }
 0x549   : > { %v798_v18 = vadd.f32 %v797_v14, %v783_v17 }
 0x54b   : > { %v802_v20 = vpack.c.bf16 %v798_v18, %v798_v18 }
 0x54d   : > { %v806_v24 = vunpack.c.l.b16 %v802_v20 }
 0x550   : > { %v799_v19 = vpop.f32.mrf.mxu3 }
 0x551   : > { %v800_v22 = vadd.f32 %v799_v19, %v783_v17 }
 0x553   : > { %v803_v23 = vpack.c.bf16 %v800_v22, %v800_v22 }
 0x555   : > { %v807_v25 = vunpack.c.l.b16 %v803_v23 }
 0x557   : > { %v808_v27 = vpack.c.b16 %v807_v25, %v806_v24 }
 0x559   : > { %809 = vrot.lane.b32.xlu2 %v808_v27, %s1105_s29 }
 0x561   : > { %873 = vrot.lane.b32.xlu2 %v1048_v12, %s1104_s28 }
 0x569   : > { %881 = vrot.lane.b32.xlu2 %v1075_v28, %s1104_s28 }
 0x5b3   : > { %v810_v32 = vpop.permute.xlu2 %809 }
 0x5b4   : > { %v812_v33 = vsel %vm460_vm2, %v1221_v30, %v810_v32 }
 0x5b5   : > { %1038 = vmatmul.msk.bf16.vlgmr.msrb.gmra.mxu0 %vm849_vm4, %v812_v33 }
 0x5bb   : > { %v874_v34 = vpop.permute.xlu2 %873 }
 0x5bc   : > { %892 = vmatpush.bf16.msrb.mxu1 %v874_v34 }
 0x5c0   : > { %893 = vmatpush.bf16.msrb.mxu1 %v872_v35 }
 0x5c3   : > { %v882_v45 = vpop.permute.xlu2 %881 }
 0x5c4   : > { %894 = vmatpush.bf16.msrb.mxu1 %v870_v37 }
 0x632   : > { %v861_v38 = vpop.f32.mrf.mxu0 }
 0x633   : > { %v862_v39 = vadd.f32 %v1075_v28, %v861_v38 }
 0x635   : > { %v866_v42 = vmax.f32 %v862_v39, 0.0 }
 0x63a   : > { %v863_v40 = vpop.f32.mrf.mxu0 }
 0x63b   : > { %v864_v41 = vadd.f32 %v1075_v28, %v863_v40 }
 0x63d   : > { %v867_v43 = vmax.f32 %v864_v41, 0.0 }
 0x63f   : > { %v868_v44 = vpack.c.bf16 %v867_v43, %v866_v42 }
 0x641   : > { %1039 = vmatmul.msk.bf16.vlgmr.msrb.gmra.mxu1 %vm849_vm4, %v868_v44 }
 0x6be   : > { %v896_v30 = vpop.f32.mrf.mxu1 }
 0x6bf   : > { %v897_v46 = vadd.f32 %v896_v30, %v882_v45 }
 0x6c1   : > { %v901_v47 = vadd.f32 %v897_v46, %v1213_v21 }
 0x6c3   : > { %903 = vst.msk [vmem:[%s402_s26] sm:$0xff] %vm460_vm2, %v901_v47 }
 0x6c6   : > { %v898_v48 = vpop.f32.mrf.mxu1 }
 0x6c7   : > { %v899_v49 = vadd.f32 %v898_v48, %v882_v45 }
 0x6c9   : > { %v902_v50 = vadd.f32 %v899_v49, %v1217_v26 }
 0x6cb   : > { %904 = vst.msk [vmem:[%s402_s26 + $0x8] sm:$0xff] %vm460_vm2, %v902_v50 }
 0x6cc PF: > { %s20_s13 = sadd.s32 1, %s1098_s13  }
 0x6cd   : > { %p17_p4 = scmp.ge.s32.totalorder %s20_s13, 4  }
 0x6cf   :  { %19 = sbr.rel (!%p17_p4) target bundleno = 1 (0x1), region = 96 }

// kernel: attentional_graph_forward.4
= control target key start
LH: loop header
LB: loop body
LE: loop exit
PB: predicated region body
PF: predicated region fallthrough
CT: control target
= control target key end

     0   :  { %s793_s21 = smov 0   ;;  %s897_s0 = inlined_call_operand.vmem [shape: f32[16,32], index: 0, kind: input, shape index: {}]   ;;  %s898_s1 = inlined_call_operand.vmem [shape: f32[16,32], index: 1, kind: input, shape index: {}]   ;;  %s899_s2 = inlined_call_operand.vmem [shape: f32[2,1,8], index: 2, kind: input, shape index: {}]   ;;  %s900_s3 = inlined_call_operand.vmem [shape: bf16[32,128], index: 3, kind: input, shape index: {}]   ;;  %s901_s4 = inlined_call_operand.vmem [shape: f32[1,224], index: 4, kind: input, shape index: {}]   ;;  %s902_s5 = inlined_call_operand.vmem [shape: bf16[64,96], index: 5, kind: input, shape index: {}]   ;;  %s903_s6 = inlined_call_operand.vmem [shape: f32[16,32], index: 6, kind: output, shape index: {}]  }
   0x1 LB: > { %s670_s22 = sadd.s32 4294967295, %s750_s21   ;;  %p674_p0 = scmp.ge.s32.totalorder %s750_s21, 1  ;;  %s750_s21 = sphi %s793_s21, %s16_s21  }
   0x2   : > { %p228_p1 = scmp.lt.s32.totalorder %s750_s21, 3 }
   0x4   : > { %p229_p2 = pnand %p674_p0, %p228_p1 }
   0x5   : > { %s752_s25 = smov (!%p229_p2), 96   ;;  %p263_p3 = scmp.lt.s32.totalorder (!%p229_p2), %s670_s22, 1 }
   0x6   : > { %232 = sbr.rel (%p229_p2) target bundleno = 1849 (0x739), region = 44  ;;  %s753_s16 = smov (!%p229_p2), 112  }
   0x7   : > { %s754_s17 = smov (!%p229_p2), 80   ;;  %s755_s18 = smov (!%p229_p2), 32  }
   0x8   : > { %s756_s19 = smov (!%p229_p2), 16   ;;  %s757_s30 = smov (!%p229_p2), 64  }
   0xb   : > { %v804_v0 = vld [vmem:[%s900_s3 + $0x8] sm:$0xff]  ;;  %v812_v1 = vld [vmem:[%s900_s3] sm:$0xff]  ;;  %s905_s22 = smov (!%p263_p3, %s670_s22), 1  ;;  %vm304_vm0 = vcmask 261120   ;;  %vm351_vm1 = vcmask 130048   ;;  %vm371_vm2 = vcmask 64512  }
   0xc   : > { %323 = vrot.lane.b32.xlu0 %v804_v0, %s752_s25  ;;  %314 = vmatpush.bf16.msra.mxu0 %v804_v0  ;;  %s820_s28 = sshll.u32 %s905_s22, 3  ;;  %v837_v4 = vld [vmem:[%s901_s4] ss:$0 sm:$0xff]  ;;  %s273_s15 = scalar_lea.vmem %s899_s2, %s905_s22  ;;  %vm393_vm3 = vcmask 1043456   ;;  %vm545_vm4 = vcmask 523264  }
   0xd   : > { %s266_s7 = scalar_lea.vmem %s897_s0, %s820_s28  ;;  %327 = vrot.lane.b32.xlu1 %v837_v4, %s752_s25  ;;  %s270_s12 = scalar_lea.vmem %s898_s1, %s820_s28  ;;  %v734_v23 = vld [vmem:[%s273_s15] ss:$0 sm:$0xff] }
   0xe   : > { %v826_v2 = vld [vmem:[%s266_s7] sm:$0xff]  ;;  %s277_s11 = scalar_lea.vmem %s903_s6, %s820_s28 }
   0xf   : > { %v830_v3 = vpack.c.bf16 %v826_v2, %v826_v2  ;;  %v282_v6 = vld [vmem:[%s270_s12] sm:$0xff] }
  0x10   : > { %315 = vmatpush.bf16.msra.mxu0 %v812_v1  ;;  %v283_v8 = vpack.c.bf16 %v282_v6, %v282_v6  ;;  %v718_v6 = vld [vmem:[%s902_s5 + $0x18] sm:$0xff] }
  0x13   : > { %686 = vmatmul.msk.bf16.vlgmr.msra.gmra.mxu0 %vm304_vm0, %v830_v3 }
  0x14   : > { %321 = vrot.lane.b32.xlu0 %v812_v1, %s752_s25 }
  0x7e   : > { %v324_v5 = vpop.permute.xlu0 %323 }
  0x7f   : > { %339 = vmatpush.bf16.msra.mxu1 %v324_v5  ;;  %v328_v11 = vpop.permute.xlu1 %327 }
  0x86   : > { %v322_v7 = vpop.permute.xlu0 %321 }
  0x87   : > { %340 = vmatpush.bf16.msra.mxu1 %v322_v7  ;;  %v717_v7 = vld [vmem:[%s902_s5 + $0x10] sm:$0xff] }
  0x8a   : > { %687 = vmatmul.msk.bf16.vlgmr.msra.gmra.mxu1 %vm304_vm0, %v283_v8  ;;  %v716_v8 = vld [vmem:[%s902_s5 + $0x8] sm:$0xff] }
  0x90   : > { %v317_v9 = vpop.f32.mrf.mxu0 }
  0x91   : > { %v318_v13 = vadd.f32 %v837_v4, %v317_v9  ;;  %v715_v9 = vld [vmem:[%s902_s5] sm:$0xff] }
  0x93   : > { %v346_v16 = vpack.c.bf16 %v318_v13, %v318_v13 }
  0x95   : > { %v411_v21 = vunpack.c.l.b16 %v346_v16 }
  0x97   : > { %v412_v22 = vpack.c.b16 %v411_v21, %v411_v21 }
  0x98   : > { %v319_v10 = vpop.f32.mrf.mxu0 }
 0x107   : > { %v342_v12 = vpop.f32.mrf.mxu1 }
 0x108   : > { %v343_v14 = vadd.f32 %v342_v12, %v328_v11 }
 0x10a   : > { %v347_v15 = vpack.c.bf16 %v343_v14, %v343_v14 }
 0x10c   : > { %v386_v17 = vunpack.c.l.b16 %v347_v15  ;;  %v356_v18 = vsel %vm351_vm1, %v347_v15, 0 }
 0x10d   : > { %365 = vmatpush.bf16.xpose.msra.mxu2 %v356_v18 }
 0x10e   : > { %v387_v19 = vpack.c.b16 %v386_v17, %v386_v17  ;;  %v735_v17 = vld [vmem:[%s901_s4 + $0x1] ss:$0 sm:$0xff] }
 0x10f   : > { %v344_v20 = vpop.f32.mrf.mxu1 }
 0x110   : > { %415 = vrot.lane.b32.xlu0 %v387_v19, %s753_s16 }
 0x114   : > { %688 = vmatmul.msk.bf16.vlgmr.msra.gmra.mxu2 %vm351_vm1, %v346_v16 }
 0x115   : > { %552 = vmatpush.bf16.msrb.mxu2 %v718_v6 }
 0x118   : > { %413 = vrot.lane.b32.xlu0 %v412_v22, %s753_s16 }
 0x119   : > { %553 = vmatpush.bf16.msrb.mxu2 %v717_v7 }
 0x11d   : > { %554 = vmatpush.bf16.msrb.mxu2 %v716_v8 }
 0x121   : > { %555 = vmatpush.bf16.msrb.mxu2 %v715_v9 }
 0x182   : > { %v416_v37 = vpop.permute.xlu0 %415 }
 0x183   : > { %v421_v41 = vsel %vm351_vm1, %v416_v37, 0 }
 0x18a   : > { %v414_v44 = vpop.permute.xlu0 %413 }
 0x197   : > { %v367_v24 = vpop.f32.mrf.mxu2 }
 0x198   : > { %v368_v25 = vadd.f32 %v734_v23, %v367_v24 }
 0x19a   : > { %v372_v26 = vsel %vm371_vm2, %v368_v25, -inf }
 0x19b   : > { %373 = vmax.xlane.f32.xlu1 %v372_v26 }
 0x19f   : > { %v369_v27 = vpop.f32.mrf.mxu2 }
 0x1b4   : > { %449 = vrot.lane.b32.xlu1 %v387_v19, %s754_s17 }
 0x1bc   : > { %476 = vrot.lane.b32.xlu1 %v812_v1, %s755_s18 }
 0x1c4   : > { %482 = vrot.lane.b32.xlu1 %v837_v4, %s755_s18 }
 0x20e   : > { %v374_v28 = vpop.xlane.xlu1 %373 }
 0x20f   : > { %v375_v29 = vsub.f32 %v368_v25, %v374_v28 }
 0x211   : > { %v376_v30 = vmul.f32 1.442695, %v375_v29 }
 0x213   : > { %736 = vpow2.f32 %v376_v30 }
 0x219   : > { %v737_v31 = vpop.eup %736 }
 0x21a   : > { %v378_v32 = vsel %vm371_vm2, %v737_v31, 0.0 }
 0x21b   : > { %379 = vadd.xlane.f32.xlu2 %v378_v32 }
 0x226   : > { %v450_v33 = vpop.permute.xlu1 %449 }
 0x227   : > { %v455_v34 = vsel %vm393_vm3, %v450_v33, 0 }
 0x228   : > { %464 = vmatpush.bf16.msrb.mxu0 %v455_v34 }
 0x22e   : > { %v477_v62 = vpop.permute.xlu1 %476 }
 0x233   : > { %388 = vrot.lane.b32.xlu2 %v387_v19, %s752_s25 }
 0x236   : > { %v483_v10 = vpop.permute.xlu1 %482 }
 0x28e   : > { %v380_v35 = vpop.xlane.xlu2 %379 }
 0x28f   : > { %v381_v36 = vmax.f32 %v380_v35, 1e-30 }
 0x291   : > { %738 = vrcp.f32 %v381_v36 }
 0x296   : > { %v389_v38 = vpop.permute.xlu2 %388 }
 0x297   : > { %v739_v39 = vpop.eup %738  ;;  %v395_v40 = vsel %vm393_vm3, %v389_v38, 0 }
 0x298   : > { %404 = vmatpush.bf16.msra.mxu3 %v395_v40  ;;  %v383_v42 = vmul.f32 %v739_v39, %v737_v31 }
 0x29a   : > { %v384_v43 = vpack.c.bf16 %v383_v42, %v383_v42 }
 0x29c   : > { %430 = vmatpush.bf16.xpose.msrb.mxu3 %v421_v41 }
 0x29d   : > { %689 = vmatmul.msk.bf16.vlgmr.msra.gmra.mxu3 %vm371_vm2, %v384_v43 }
 0x2ad   : > { %690 = vmatmul.msk.bf16.vlgmr.msrb.gmra.mxu3 %vm351_vm1, %v414_v44 }
 0x320   : > { %v406_v45 = vpop.f32.mrf.mxu3 }
 0x328   : > { %v408_v46 = vpop.f32.mrf.mxu3 }
 0x330   : > { %v432_v47 = vpop.f32.mrf.mxu3 }
 0x331   : > { %v433_v48 = vadd.f32 %v734_v23, %v432_v47 }
 0x333   : > { %v436_v49 = vsel %vm371_vm2, %v433_v48, -inf }
 0x334   : > { %437 = vmax.xlane.f32.xlu0 %v436_v49 }
 0x338   : > { %v434_v50 = vpop.f32.mrf.mxu3 }
 0x3a7   : > { %v438_v51 = vpop.xlane.xlu0 %437 }
 0x3a8   : > { %v439_v52 = vsub.f32 %v433_v48, %v438_v51 }
 0x3aa   : > { %v440_v53 = vmul.f32 1.442695, %v439_v52 }
 0x3ac   : > { %740 = vpow2.f32 %v440_v53 }
 0x3b2   : > { %v741_v54 = vpop.eup %740 }
 0x3b3   : > { %v442_v55 = vsel %vm371_vm2, %v741_v54, 0.0 }
 0x3b4   : > { %443 = vadd.xlane.f32.xlu2 %v442_v55 }
 0x3cc   : > { %478 = vrot.lane.b32.xlu2 %v804_v0, %s755_s18 }
 0x3d4   : > { %567 = vrot.lane.b32.xlu2 %v717_v7, %s757_s30 }
 0x3dc   : > { %575 = vrot.lane.b32.xlu2 %v735_v17, %s757_s30 }
 0x427   : > { %v444_v56 = vpop.xlane.xlu2 %443 }
 0x428   : > { %v445_v57 = vmax.f32 %v444_v56, 1e-30 }
 0x42a   : > { %742 = vrcp.f32 %v445_v57 }
 0x42f   : > { %v479_v61 = vpop.permute.xlu2 %478 }
 0x430   : > { %v743_v58 = vpop.eup %742  ;;  %494 = vmatpush.bf16.msrb.mxu1 %v479_v61 }
 0x431   : > { %v447_v59 = vmul.f32 %v743_v58, %v741_v54 }
 0x433   : > { %v448_v60 = vpack.c.bf16 %v447_v59, %v447_v59 }
 0x434   : > { %495 = vmatpush.bf16.msrb.mxu1 %v477_v62 }
 0x435   : > { %691 = vmatmul.msk.bf16.vlgmr.msrb.gmra.mxu0 %vm371_vm2, %v448_v60 }
 0x437   : > { %v568_v19 = vpop.permute.xlu2 %567 }
 0x43f   : > { %v576_v29 = vpop.permute.xlu2 %575 }
 0x4b2   : > { %v466_v63 = vpop.f32.mrf.mxu0 }
 0x4b3   : > { %471 = vrot.lane.b32.xlu0 %v466_v63, %s756_s19 }
 0x4ba   : > { %v468_v1 = vpop.f32.mrf.mxu0 }
 0x4bb   : > { %569 = vrot.lane.b32.xlu0 %v718_v6, %s757_s30 }
 0x4c3   : > { %563 = vrot.lane.b32.xlu0 %v715_v9, %s757_s30 }
 0x525   : > { %v472_v4 = vpop.permute.xlu0 %471 }
 0x526   : > { %v474_v5 = vsel %vm351_vm1, %v406_v45, %v472_v4 }
 0x527   : > { %v475_v0 = vpack.c.bf16 %v474_v5, %v474_v5 }
 0x529   : > { %692 = vmatmul.msk.bf16.vlgmr.msrb.gmra.mxu1 %vm304_vm0, %v475_v0 }
 0x52d   : > { %v570_v18 = vpop.permute.xlu0 %569 }
 0x52e   : > { %585 = vmatpush.bf16.msra.mxu3 %v570_v18 }
 0x532   : > { %586 = vmatpush.bf16.msra.mxu3 %v568_v19 }
 0x535   : > { %v564_v23 = vpop.permute.xlu0 %563 }
 0x5a6   : > { %v497_v11 = vpop.f32.mrf.mxu1 }
 0x5a7   : > { %v498_v12 = vadd.f32 %v497_v11, %v483_v10 }
 0x5a9   : > { %v501_v13 = vpack.c.bf16 %v498_v12, %v498_v12 }
 0x5ab   : > { %v503_v14 = vunpack.c.l.b16 %v501_v13 }
 0x5ad   : > { %v504_v15 = vpack.c.b16 %v503_v14, %v503_v14 }
 0x5ae   : > { %v499_v16 = vpop.f32.mrf.mxu1 }
 0x5af   : > { %505 = vrot.lane.b32.xlu1 %v504_v15, %s755_s18 }
 0x5b7   : > { %565 = vrot.lane.b32.xlu1 %v716_v8, %s757_s30 }
 0x621   : > { %v506_v20 = vpop.permute.xlu1 %505 }
 0x622   : > { %v508_v21 = vsel %vm304_vm0, %v830_v3, %v506_v20 }
 0x623   : > { %709 = vmatmul.msk.bf16.vlgmr.msrb.gmra.mxu2 %vm545_vm4, %v508_v21 }
 0x629   : > { %v566_v22 = vpop.permute.xlu1 %565 }
 0x62a   : > { %587 = vmatpush.bf16.msra.mxu3 %v566_v22 }
 0x62e   : > { %588 = vmatpush.bf16.msra.mxu3 %v564_v23 }
 0x6a6   : > { %v557_v24 = vpop.f32.mrf.mxu2 }
 0x6a7   : > { %v558_v25 = vadd.f32 %v735_v17, %v557_v24 }
 0x6a9   : > { %v561_v26 = vmax.f32 %v558_v25, 0.0 }
 0x6ab   : > { %v562_v27 = vpack.c.bf16 %v561_v26, %v561_v26 }
 0x6ad   : > { %710 = vmatmul.msk.bf16.vlgmr.msra.gmra.mxu3 %vm545_vm4, %v562_v27 }
 0x6ae   : > { %v559_v28 = vpop.f32.mrf.mxu2 }
 0x730   : > { %v590_v30 = vpop.f32.mrf.mxu3 }
 0x731   : > { %v591_v31 = vadd.f32 %v590_v30, %v576_v29 }
 0x733   : > { %v594_v3 = vadd.f32 %v591_v31, %v826_v2 }
 0x735   : > { %595 = vst.msk [vmem:[%s277_s11] sm:$0xff] %vm304_vm0, %v594_v3 }
 0x738   : > { %v592_v32 = vpop.f32.mrf.mxu3 }
 0x739 PF: > { %s16_s21 = sadd.s32 1, %s750_s21  }
 0x73a   : > { %p13_p4 = scmp.ge.s32.totalorder %s16_s21, 4  }
 0x73c   :  { %15 = sbr.rel (!%p13_p4) target bundleno = 1 (0x1), region = 80 }

</bundles_post_ra>
